<compile_context>
chip_gen: v6e
topology: v6e:2x2x1
jax: 0.10.0
libtpu: 0.0.40
codegen_flags: <defaults>
</compile_context>

<pallas_src>
import functools

import jax
import jax.numpy as jnp
from jax.experimental import pallas as pl
from jax.experimental.pallas import tpu as pltpu


_BN_EPS = 1e-5
_PACK = 4          # spatial rows packed per kernel row (4 x 32 ch = 128 lanes)


# ---------------------------------------------------------------------------
# Fused forward kernel: the entire network in one pallas_call (no grid).
# ---------------------------------------------------------------------------

def _fused_forward_kernel(x_ref, w0_ref, b0_ref, ws_ref, bs_ref,
                          bng_ref, bnb_ref, w4_ref, b4_ref, o_ref, *, n_rows):
    f32 = jnp.float32

    def mm(v, k, relu):
        # (R, 128) @ (128, 128) block-diagonal weight + lane-tiled bias.
        y = jnp.dot(v, ws_ref[k], preferred_element_type=f32) + bs_ref[k]
        return jnp.maximum(y, 0.0) if relu else y

    def lane_group_sum(s):
        # s: (1, 128) per-(group, channel) partial sums. Two lane rotations
        # (XLU slot, nearly free) leave EVERY lane holding the full
        # per-channel sum over the 4 packed lane groups.
        s = s + pltpu.roll(s, shift=64, axis=1)
        s = s + pltpu.roll(s, shift=32, axis=1)
        return s

    # Lift: fc0 (28->32 per lane group via the pre-block-diagonalized
    # (112, 128) weight — no activation channel padding), relu, fc1, relu, fc2.
    h = jnp.dot(x_ref[...].astype(f32), w0_ref[...],
                preferred_element_type=f32) + b0_ref[...]
    h = jnp.maximum(h, 0.0)
    h = mm(h, 0, True)     # fc1 + relu
    h = mm(h, 1, False)    # fc2

    inv_n = 1.0 / n_rows
    for i in range(4):
        # 1x1 conv w_i (pointwise channel matmul). SpectralConv output is dead
        # in the reference forward and is not computed.
        h2 = mm(h, 2 + i, False)
        # Training-mode BatchNorm2d, two-pass (centered) batch statistics.
        mean = lane_group_sum(jnp.sum(h2, axis=0, keepdims=True)) * inv_n
        xc = h2 - mean
        var = lane_group_sum(jnp.sum(xc * xc, axis=0, keepdims=True)) * inv_n
        h = xc * (bng_ref[i] * jax.lax.rsqrt(var + _BN_EPS)) + bnb_ref[i]
        if i < 3:
            h = jnp.maximum(h, 0.0)

    # Project: fc3 + relu, then fc4 as a (128 -> 4) block-diagonal matmul:
    # output column g holds the scalar for original row 4*r + g.
    h = mm(h, 6, True)
    y = jnp.dot(h, w4_ref[...], preferred_element_type=f32) + b4_ref[...]
    o_ref[...] = y.astype(o_ref.dtype)


# ---------------------------------------------------------------------------
# One-time parameter packing (init / checkpoint-load time, NOT per forward)
# ---------------------------------------------------------------------------

def pack_params(p, *, pack=_PACK):
    """Block-diagonalize weights and lane-tile per-channel vectors, once."""
    f32 = jnp.float32
    eye = jnp.eye(pack, dtype=f32)
    blk = lambda w: jnp.kron(eye, w.astype(f32))        # block-diagonal
    tile = lambda v: jnp.tile(v.astype(f32), (1, pack))  # lane-tile x pack

    width = p["fc1_w"].shape[0]
    assert p["fc3_w"].shape == (width, width), "packing assumes q_width == width"

    return {
        "w0": blk(p["fc0_w"]),                                   # (4*28, 128)
        "b0": tile(p["fc0_b"]),                                  # (1, 128)
        "ws": jnp.stack([blk(p["fc1_w"]), blk(p["fc2_w"]),
                         blk(p["w0_w"]), blk(p["w1_w"]),
                         blk(p["w2_w"]), blk(p["w3_w"]),
                         blk(p["fc3_w"])]),                      # (7, 128, 128)
        "bs": jnp.stack([tile(p["fc1_b"]), tile(p["fc2_b"]),
                         tile(p["w0_b"]), tile(p["w1_b"]),
                         tile(p["w2_b"]), tile(p["w3_b"]),
                         tile(p["fc3_b"])]),                     # (7, 1, 128)
        "bng": jnp.stack([tile(p[f"bn{i}_g"]) for i in range(4)]),
        "bnb": jnp.stack([tile(p[f"bn{i}_b"]) for i in range(4)]),
        "w4": blk(p["fc4_w"]),                                   # (128, 4)
        "b4": jnp.tile(p["fc4_b"].astype(f32), (1, pack)),       # (1, 4)
        "in_ch": int(p["fc0_w"].shape[0]),
        "width": int(width),
        "pack": int(pack),
    }


# ---------------------------------------------------------------------------
# Forward wrapper: single pallas_call, no per-step parameter reshuffling.
# ---------------------------------------------------------------------------

def simple_block2d_forward(x, pp):
    b, sx, st, cin = x.shape
    N = b * sx * st
    pack, width = pp["pack"], pp["width"]
    assert cin == pp["in_ch"], (cin, pp["in_ch"])
    # TODO(synk): rows not divisible by the packing factor would need a masked
    # tail (and masked BN stats); realistic FNO grids are multiples of 4.
    assert N % pack == 0, (N, pack)
    R = N // pack
    C = pack * width                                     # 128 lanes

    # Zero-copy row packing: `pack` consecutive spatial rows share one kernel
    # row, each in its own `width`-lane group. No channel-pad concatenate, so
    # input HBM traffic is exactly one read of x.
    xp = x.reshape(R, pack * cin)

    # Per-generation VMEM budget (v5e/v6e: 128 MiB physical, v7x: 64 MiB).
    try:
        cap = int(pltpu.get_tpu_info().vmem_capacity_bytes)
    except Exception:
        cap = 64 * 1024 * 1024
    if cap <= 0:
        cap = 64 * 1024 * 1024
    vmem_budget = min(cap * 3 // 4, 112 * 1024 * 1024)

    # Live set: input slab + a few activation-sized temporaries + weights.
    # The packed layout is lane-dense, so logical bytes == physical bytes.
    act_bytes = R * C * 4
    weight_bytes = (7 * C * C + pack * cin * C + 16 * C) * 4
    # TODO(synk): beyond this limit, fall back to a row-tiled pipelined grid
    # (per-BN stats pass + apply pass) instead of asserting.
    assert 6 * act_bytes + weight_bytes <= vmem_budget, (
        "activation too large for the single fused kernel")

    # TODO(synk): on v7x, split rows across the 2 TensorCores (core_map +
    # cross-core BN partial-sum exchange) for up to ~2x; single-TC here.
    vmem = pl.BlockSpec(memory_space=pltpu.MemorySpace.VMEM)
    out = pl.pallas_call(
        functools.partial(_fused_forward_kernel, n_rows=N),
        out_shape=jax.ShapeDtypeStruct((R, pack), jnp.float32),
        in_specs=[vmem] * 9,
        out_specs=vmem,
        compiler_params=pltpu.CompilerParams(vmem_limit_bytes=vmem_budget),
    )(xp, pp["w0"], pp["b0"], pp["ws"], pp["bs"],
      pp["bng"], pp["bnb"], pp["w4"], pp["b4"])

    # out[r, g] is the fc4 scalar for original row pack*r + g; the contiguous
    # (free) reshape restores (batch, x, t, 1).
    return out.reshape(b, sx, st, 1)


# ---------------------------------------------------------------------------
# Parameter init (deterministic, mirrors the module's __init__ shapes)
# ---------------------------------------------------------------------------

def init_params(key, *, in_ch=28, width=32, q_width=32, modes_x=4, modes_t=4):
    keys = jax.random.split(key, 64)   # enough for all 34 draws below
    ki = iter(keys)

    def lin(cin, cout):
        w = 0.1 * jax.random.normal(next(ki), (cin, cout), jnp.float32)
        b = 0.1 * jax.random.normal(next(ki), (1, cout), jnp.float32)
        return w, b

    p = {}
    p["fc0_w"], p["fc0_b"] = lin(in_ch, width)
    p["fc1_w"], p["fc1_b"] = lin(width, width)
    p["fc2_w"], p["fc2_b"] = lin(width, width)
    for i in range(4):
        # nn.Conv1d(width, width, 1) == per-pixel (width -> width) linear
        p[f"w{i}_w"], p[f"w{i}_b"] = lin(width, width)
        # BatchNorm2d affine params
        p[f"bn{i}_g"] = 1.0 + 0.05 * jax.random.normal(
            next(ki), (1, width), jnp.float32)
        p[f"bn{i}_b"] = 0.05 * jax.random.normal(
            next(ki), (1, width), jnp.float32)
    p["fc3_w"], p["fc3_b"] = lin(width, q_width)
    p["fc4_w"], p["fc4_b"] = lin(q_width, 1)

    # SpectralConv2d_fast weights (present in the module but dead in forward)
    scale = 1.0 / (width * width)
    for i in range(4):
        p[f"spec{i}_w1"] = scale * jax.random.uniform(
            next(ki), (width, width, modes_x, modes_t, 2), jnp.float32)
        p[f"spec{i}_w2"] = scale * jax.random.uniform(
            next(ki), (width, width, modes_x, modes_t, 2), jnp.float32)
    return p


# ---------------------------------------------------------------------------
# Pure-JAX reference (same math, full-precision dots, unpacked layout)
# ---------------------------------------------------------------------------

def reference_forward(x, p):
    b, sx, st, cin = x.shape
    N = b * sx * st
    h = x.reshape(N, cin).astype(jnp.float32)
    relu = lambda t: jnp.maximum(t, 0.0)
    dot = lambda a, w: jnp.dot(a, w, precision=jax.lax.Precision.HIGHEST)

    h = relu(dot(h, p["fc0_w"]) + p["fc0_b"])
    h = relu(dot(h, p["fc1_w"]) + p["fc1_b"])
    h = dot(h, p["fc2_w"]) + p["fc2_b"]
    for i in range(4):
        h2 = dot(h, p[f"w{i}_w"]) + p[f"w{i}_b"]
        mean = jnp.mean(h2, axis=0, keepdims=True)
        var = jnp.var(h2, axis=0, keepdims=True)
        h = (h2 - mean) / jnp.sqrt(var + _BN_EPS) * p[f"bn{i}_g"] + p[f"bn{i}_b"]
        if i < 3:
            h = relu(h)
    h = relu(dot(h, p["fc3_w"]) + p["fc3_b"])
    h = dot(h, p["fc4_w"]) + p["fc4_b"]
    return h.reshape(b, sx, st, 1)


# ---------------------------------------------------------------------------

if __name__ == "__main__":
    key = jax.random.PRNGKey(0)
    k_param, k_x = jax.random.split(key)

    batch, size_x, size_t, in_ch = 2, 16, 8, 28    # N = 256 rows -> 64 packed
    width, q_width, modes_x, modes_t = 32, 32, 4, 4

    params = init_params(k_param, in_ch=in_ch, width=width, q_width=q_width,
                         modes_x=modes_x, modes_t=modes_t)
    packed = pack_params(params)       # one-time packing (not per forward)
    x = jax.random.normal(k_x, (batch, size_x, size_t, in_ch), jnp.float32)

    out = simple_block2d_forward(x, packed)
    out = jax.block_until_ready(out)

    ref = reference_forward(x, params)
    assert out.shape == (batch, size_x, size_t, 1), out.shape
    max_err = float(jnp.max(jnp.abs(out - ref)))
    assert jnp.allclose(out, ref, rtol=1e-3, atol=1e-3), max_err

    print("KERNEL_OK")
</pallas_src>

<mosaic_0001>
module attributes {stable_mosaic.version = 11 : i64} {
  func.func @_fused_forward_kernel(%arg0: memref<64x112xf32, #tpu.memory_space<vmem>>, %arg1: memref<112x128xf32, #tpu.memory_space<vmem>>, %arg2: memref<1x128xf32, #tpu.memory_space<vmem>>, %arg3: memref<7x128x128xf32, #tpu.memory_space<vmem>>, %arg4: memref<7x1x128xf32, #tpu.memory_space<vmem>>, %arg5: memref<4x1x128xf32, #tpu.memory_space<vmem>>, %arg6: memref<4x1x128xf32, #tpu.memory_space<vmem>>, %arg7: memref<128x4xf32, #tpu.memory_space<vmem>>, %arg8: memref<1x4xf32, #tpu.memory_space<vmem>>, %arg9: memref<64x4xf32, #tpu.memory_space<vmem>>) attributes {dimension_semantics = [], scalar_prefetch = 0 : i64, scratch_operands = 0 : i64, tpu.core_type = #tpu.core_type<tc>} {
    %c0 = arith.constant 0 : index
    %c0_0 = arith.constant 0 : index
    %0 = vector.load %arg0[%c0, %c0_0] : memref<64x112xf32, #tpu.memory_space<vmem>>, vector<64x112xf32>
    %c0_1 = arith.constant 0 : index
    %c0_2 = arith.constant 0 : index
    %1 = vector.load %arg1[%c0_1, %c0_2] : memref<112x128xf32, #tpu.memory_space<vmem>>, vector<112x128xf32>
    %cst = arith.constant dense<0.000000e+00> : vector<64x128xf32>
    %2 = tpu.matmul %0, %1, %cst {dimension_numbers = #tpu.dot_dimension_numbers<[1], [0], [0], [1], [0, 0, 1, 1], [], []>} : vector<64x112xf32>, vector<112x128xf32>, vector<64x128xf32> -> vector<64x128xf32>
    %c0_3 = arith.constant 0 : index
    %c0_4 = arith.constant 0 : index
    %3 = vector.load %arg2[%c0_3, %c0_4] : memref<1x128xf32, #tpu.memory_space<vmem>>, vector<1x128xf32>
    %4 = vector.broadcast %3 : vector<1x128xf32> to vector<64x128xf32>
    %5 = arith.addf %2, %4 : vector<64x128xf32>
    %cst_5 = arith.constant 0.000000e+00 : f32
    %6 = vector.broadcast %cst_5 : f32 to vector<64x128xf32>
    %7 = arith.maximumf %5, %6 : vector<64x128xf32>
    %c0_6 = arith.constant 0 : index
    %c0_7 = arith.constant 0 : index
    %c0_8 = arith.constant 0 : index
    %8 = vector.load %arg3[%c0_6, %c0_7, %c0_8] : memref<7x128x128xf32, #tpu.memory_space<vmem>>, vector<1x128x128xf32>
    %9 = vector.shape_cast %8 : vector<1x128x128xf32> to vector<128x128xf32>
    %cst_9 = arith.constant dense<0.000000e+00> : vector<64x128xf32>
    %10 = tpu.matmul %7, %9, %cst_9 {dimension_numbers = #tpu.dot_dimension_numbers<[1], [0], [0], [1], [0, 0, 1, 1], [], []>} : vector<64x128xf32>, vector<128x128xf32>, vector<64x128xf32> -> vector<64x128xf32>
    %c0_10 = arith.constant 0 : index
    %c0_11 = arith.constant 0 : index
    %c0_12 = arith.constant 0 : index
    %11 = vector.load %arg4[%c0_10, %c0_11, %c0_12] : memref<7x1x128xf32, #tpu.memory_space<vmem>>, vector<1x1x128xf32>
    %12 = vector.shape_cast %11 : vector<1x1x128xf32> to vector<1x128xf32>
    %13 = vector.broadcast %12 : vector<1x128xf32> to vector<64x128xf32>
    %14 = arith.addf %10, %13 : vector<64x128xf32>
    %cst_13 = arith.constant 0.000000e+00 : f32
    %15 = vector.broadcast %cst_13 : f32 to vector<64x128xf32>
    %16 = arith.maximumf %14, %15 : vector<64x128xf32>
    %c1 = arith.constant 1 : index
    %c0_14 = arith.constant 0 : index
    %c0_15 = arith.constant 0 : index
    %17 = vector.load %arg3[%c1, %c0_14, %c0_15] : memref<7x128x128xf32, #tpu.memory_space<vmem>>, vector<1x128x128xf32>
    %18 = vector.shape_cast %17 : vector<1x128x128xf32> to vector<128x128xf32>
    %cst_16 = arith.constant dense<0.000000e+00> : vector<64x128xf32>
    %19 = tpu.matmul %16, %18, %cst_16 {dimension_numbers = #tpu.dot_dimension_numbers<[1], [0], [0], [1], [0, 0, 1, 1], [], []>} : vector<64x128xf32>, vector<128x128xf32>, vector<64x128xf32> -> vector<64x128xf32>
    %c1_17 = arith.constant 1 : index
    %c0_18 = arith.constant 0 : index
    %c0_19 = arith.constant 0 : index
    %20 = vector.load %arg4[%c1_17, %c0_18, %c0_19] : memref<7x1x128xf32, #tpu.memory_space<vmem>>, vector<1x1x128xf32>
    %21 = vector.shape_cast %20 : vector<1x1x128xf32> to vector<1x128xf32>
    %22 = vector.broadcast %21 : vector<1x128xf32> to vector<64x128xf32>
    %23 = arith.addf %19, %22 : vector<64x128xf32>
    %c2 = arith.constant 2 : index
    %c0_20 = arith.constant 0 : index
    %c0_21 = arith.constant 0 : index
    %24 = vector.load %arg3[%c2, %c0_20, %c0_21] : memref<7x128x128xf32, #tpu.memory_space<vmem>>, vector<1x128x128xf32>
    %25 = vector.shape_cast %24 : vector<1x128x128xf32> to vector<128x128xf32>
    %cst_22 = arith.constant dense<0.000000e+00> : vector<64x128xf32>
    %26 = tpu.matmul %23, %25, %cst_22 {dimension_numbers = #tpu.dot_dimension_numbers<[1], [0], [0], [1], [0, 0, 1, 1], [], []>} : vector<64x128xf32>, vector<128x128xf32>, vector<64x128xf32> -> vector<64x128xf32>
    %c2_23 = arith.constant 2 : index
    %c0_24 = arith.constant 0 : index
    %c0_25 = arith.constant 0 : index
    %27 = vector.load %arg4[%c2_23, %c0_24, %c0_25] : memref<7x1x128xf32, #tpu.memory_space<vmem>>, vector<1x1x128xf32>
    %28 = vector.shape_cast %27 : vector<1x1x128xf32> to vector<1x128xf32>
    %29 = vector.broadcast %28 : vector<1x128xf32> to vector<64x128xf32>
    %30 = arith.addf %26, %29 : vector<64x128xf32>
    %cst_26 = arith.constant dense<0.000000e+00> : vector<128xf32>
    %31 = vector.multi_reduction <add>, %30, %cst_26 [0] : vector<64x128xf32> to vector<128xf32>
    %32 = vector.shape_cast %31 : vector<128xf32> to vector<1x128xf32>
    %c64_i32 = arith.constant 64 : i32
    %33 = tpu.dynamic_rotate %32 by %c64_i32 dim 1 : vector<1x128xf32>, i32 -> vector<1x128xf32>
    %34 = arith.addf %32, %33 : vector<1x128xf32>
    %c32_i32 = arith.constant 32 : i32
    %35 = tpu.dynamic_rotate %34 by %c32_i32 dim 1 : vector<1x128xf32>, i32 -> vector<1x128xf32>
    %36 = arith.addf %34, %35 : vector<1x128xf32>
    %cst_27 = arith.constant 3.906250e-03 : f32
    %37 = vector.broadcast %cst_27 : f32 to vector<1x128xf32>
    %38 = arith.mulf %36, %37 : vector<1x128xf32>
    %39 = vector.broadcast %38 : vector<1x128xf32> to vector<64x128xf32>
    %40 = arith.subf %30, %39 : vector<64x128xf32>
    %41 = arith.mulf %40, %40 : vector<64x128xf32>
    %cst_28 = arith.constant dense<0.000000e+00> : vector<128xf32>
    %42 = vector.multi_reduction <add>, %41, %cst_28 [0] : vector<64x128xf32> to vector<128xf32>
    %43 = vector.shape_cast %42 : vector<128xf32> to vector<1x128xf32>
    %c64_i32_29 = arith.constant 64 : i32
    %44 = tpu.dynamic_rotate %43 by %c64_i32_29 dim 1 : vector<1x128xf32>, i32 -> vector<1x128xf32>
    %45 = arith.addf %43, %44 : vector<1x128xf32>
    %c32_i32_30 = arith.constant 32 : i32
    %46 = tpu.dynamic_rotate %45 by %c32_i32_30 dim 1 : vector<1x128xf32>, i32 -> vector<1x128xf32>
    %47 = arith.addf %45, %46 : vector<1x128xf32>
    %cst_31 = arith.constant 3.906250e-03 : f32
    %48 = vector.broadcast %cst_31 : f32 to vector<1x128xf32>
    %49 = arith.mulf %47, %48 : vector<1x128xf32>
    %c0_32 = arith.constant 0 : index
    %c0_33 = arith.constant 0 : index
    %c0_34 = arith.constant 0 : index
    %50 = vector.load %arg5[%c0_32, %c0_33, %c0_34] : memref<4x1x128xf32, #tpu.memory_space<vmem>>, vector<1x1x128xf32>
    %51 = vector.shape_cast %50 : vector<1x1x128xf32> to vector<1x128xf32>
    %cst_35 = arith.constant 9.99999974E-6 : f32
    %52 = vector.broadcast %cst_35 : f32 to vector<1x128xf32>
    %53 = arith.addf %49, %52 : vector<1x128xf32>
    %54 = math.rsqrt %53 : vector<1x128xf32>
    %55 = arith.mulf %51, %54 : vector<1x128xf32>
    %56 = vector.broadcast %55 : vector<1x128xf32> to vector<64x128xf32>
    %57 = arith.mulf %40, %56 : vector<64x128xf32>
    %c0_36 = arith.constant 0 : index
    %c0_37 = arith.constant 0 : index
    %c0_38 = arith.constant 0 : index
    %58 = vector.load %arg6[%c0_36, %c0_37, %c0_38] : memref<4x1x128xf32, #tpu.memory_space<vmem>>, vector<1x1x128xf32>
    %59 = vector.shape_cast %58 : vector<1x1x128xf32> to vector<1x128xf32>
    %60 = vector.broadcast %59 : vector<1x128xf32> to vector<64x128xf32>
    %61 = arith.addf %57, %60 : vector<64x128xf32>
    %cst_39 = arith.constant 0.000000e+00 : f32
    %62 = vector.broadcast %cst_39 : f32 to vector<64x128xf32>
    %63 = arith.maximumf %61, %62 : vector<64x128xf32>
    %c3 = arith.constant 3 : index
    %c0_40 = arith.constant 0 : index
    %c0_41 = arith.constant 0 : index
    %64 = vector.load %arg3[%c3, %c0_40, %c0_41] : memref<7x128x128xf32, #tpu.memory_space<vmem>>, vector<1x128x128xf32>
    %65 = vector.shape_cast %64 : vector<1x128x128xf32> to vector<128x128xf32>
    %cst_42 = arith.constant dense<0.000000e+00> : vector<64x128xf32>
    %66 = tpu.matmul %63, %65, %cst_42 {dimension_numbers = #tpu.dot_dimension_numbers<[1], [0], [0], [1], [0, 0, 1, 1], [], []>} : vector<64x128xf32>, vector<128x128xf32>, vector<64x128xf32> -> vector<64x128xf32>
    %c3_43 = arith.constant 3 : index
    %c0_44 = arith.constant 0 : index
    %c0_45 = arith.constant 0 : index
    %67 = vector.load %arg4[%c3_43, %c0_44, %c0_45] : memref<7x1x128xf32, #tpu.memory_space<vmem>>, vector<1x1x128xf32>
    %68 = vector.shape_cast %67 : vector<1x1x128xf32> to vector<1x128xf32>
    %69 = vector.broadcast %68 : vector<1x128xf32> to vector<64x128xf32>
    %70 = arith.addf %66, %69 : vector<64x128xf32>
    %cst_46 = arith.constant dense<0.000000e+00> : vector<128xf32>
    %71 = vector.multi_reduction <add>, %70, %cst_46 [0] : vector<64x128xf32> to vector<128xf32>
    %72 = vector.shape_cast %71 : vector<128xf32> to vector<1x128xf32>
    %c64_i32_47 = arith.constant 64 : i32
    %73 = tpu.dynamic_rotate %72 by %c64_i32_47 dim 1 : vector<1x128xf32>, i32 -> vector<1x128xf32>
    %74 = arith.addf %72, %73 : vector<1x128xf32>
    %c32_i32_48 = arith.constant 32 : i32
    %75 = tpu.dynamic_rotate %74 by %c32_i32_48 dim 1 : vector<1x128xf32>, i32 -> vector<1x128xf32>
    %76 = arith.addf %74, %75 : vector<1x128xf32>
    %cst_49 = arith.constant 3.906250e-03 : f32
    %77 = vector.broadcast %cst_49 : f32 to vector<1x128xf32>
    %78 = arith.mulf %76, %77 : vector<1x128xf32>
    %79 = vector.broadcast %78 : vector<1x128xf32> to vector<64x128xf32>
    %80 = arith.subf %70, %79 : vector<64x128xf32>
    %81 = arith.mulf %80, %80 : vector<64x128xf32>
    %cst_50 = arith.constant dense<0.000000e+00> : vector<128xf32>
    %82 = vector.multi_reduction <add>, %81, %cst_50 [0] : vector<64x128xf32> to vector<128xf32>
    %83 = vector.shape_cast %82 : vector<128xf32> to vector<1x128xf32>
    %c64_i32_51 = arith.constant 64 : i32
    %84 = tpu.dynamic_rotate %83 by %c64_i32_51 dim 1 : vector<1x128xf32>, i32 -> vector<1x128xf32>
    %85 = arith.addf %83, %84 : vector<1x128xf32>
    %c32_i32_52 = arith.constant 32 : i32
    %86 = tpu.dynamic_rotate %85 by %c32_i32_52 dim 1 : vector<1x128xf32>, i32 -> vector<1x128xf32>
    %87 = arith.addf %85, %86 : vector<1x128xf32>
    %cst_53 = arith.constant 3.906250e-03 : f32
    %88 = vector.broadcast %cst_53 : f32 to vector<1x128xf32>
    %89 = arith.mulf %87, %88 : vector<1x128xf32>
    %c1_54 = arith.constant 1 : index
    %c0_55 = arith.constant 0 : index
    %c0_56 = arith.constant 0 : index
    %90 = vector.load %arg5[%c1_54, %c0_55, %c0_56] : memref<4x1x128xf32, #tpu.memory_space<vmem>>, vector<1x1x128xf32>
    %91 = vector.shape_cast %90 : vector<1x1x128xf32> to vector<1x128xf32>
    %cst_57 = arith.constant 9.99999974E-6 : f32
    %92 = vector.broadcast %cst_57 : f32 to vector<1x128xf32>
    %93 = arith.addf %89, %92 : vector<1x128xf32>
    %94 = math.rsqrt %93 : vector<1x128xf32>
    %95 = arith.mulf %91, %94 : vector<1x128xf32>
    %96 = vector.broadcast %95 : vector<1x128xf32> to vector<64x128xf32>
    %97 = arith.mulf %80, %96 : vector<64x128xf32>
    %c1_58 = arith.constant 1 : index
    %c0_59 = arith.constant 0 : index
    %c0_60 = arith.constant 0 : index
    %98 = vector.load %arg6[%c1_58, %c0_59, %c0_60] : memref<4x1x128xf32, #tpu.memory_space<vmem>>, vector<1x1x128xf32>
    %99 = vector.shape_cast %98 : vector<1x1x128xf32> to vector<1x128xf32>
    %100 = vector.broadcast %99 : vector<1x128xf32> to vector<64x128xf32>
    %101 = arith.addf %97, %100 : vector<64x128xf32>
    %cst_61 = arith.constant 0.000000e+00 : f32
    %102 = vector.broadcast %cst_61 : f32 to vector<64x128xf32>
    %103 = arith.maximumf %101, %102 : vector<64x128xf32>
    %c4 = arith.constant 4 : index
    %c0_62 = arith.constant 0 : index
    %c0_63 = arith.constant 0 : index
    %104 = vector.load %arg3[%c4, %c0_62, %c0_63] : memref<7x128x128xf32, #tpu.memory_space<vmem>>, vector<1x128x128xf32>
    %105 = vector.shape_cast %104 : vector<1x128x128xf32> to vector<128x128xf32>
    %cst_64 = arith.constant dense<0.000000e+00> : vector<64x128xf32>
    %106 = tpu.matmul %103, %105, %cst_64 {dimension_numbers = #tpu.dot_dimension_numbers<[1], [0], [0], [1], [0, 0, 1, 1], [], []>} : vector<64x128xf32>, vector<128x128xf32>, vector<64x128xf32> -> vector<64x128xf32>
    %c4_65 = arith.constant 4 : index
    %c0_66 = arith.constant 0 : index
    %c0_67 = arith.constant 0 : index
    %107 = vector.load %arg4[%c4_65, %c0_66, %c0_67] : memref<7x1x128xf32, #tpu.memory_space<vmem>>, vector<1x1x128xf32>
    %108 = vector.shape_cast %107 : vector<1x1x128xf32> to vector<1x128xf32>
    %109 = vector.broadcast %108 : vector<1x128xf32> to vector<64x128xf32>
    %110 = arith.addf %106, %109 : vector<64x128xf32>
    %cst_68 = arith.constant dense<0.000000e+00> : vector<128xf32>
    %111 = vector.multi_reduction <add>, %110, %cst_68 [0] : vector<64x128xf32> to vector<128xf32>
    %112 = vector.shape_cast %111 : vector<128xf32> to vector<1x128xf32>
    %c64_i32_69 = arith.constant 64 : i32
    %113 = tpu.dynamic_rotate %112 by %c64_i32_69 dim 1 : vector<1x128xf32>, i32 -> vector<1x128xf32>
    %114 = arith.addf %112, %113 : vector<1x128xf32>
    %c32_i32_70 = arith.constant 32 : i32
    %115 = tpu.dynamic_rotate %114 by %c32_i32_70 dim 1 : vector<1x128xf32>, i32 -> vector<1x128xf32>
    %116 = arith.addf %114, %115 : vector<1x128xf32>
    %cst_71 = arith.constant 3.906250e-03 : f32
    %117 = vector.broadcast %cst_71 : f32 to vector<1x128xf32>
    %118 = arith.mulf %116, %117 : vector<1x128xf32>
    %119 = vector.broadcast %118 : vector<1x128xf32> to vector<64x128xf32>
    %120 = arith.subf %110, %119 : vector<64x128xf32>
    %121 = arith.mulf %120, %120 : vector<64x128xf32>
    %cst_72 = arith.constant dense<0.000000e+00> : vector<128xf32>
    %122 = vector.multi_reduction <add>, %121, %cst_72 [0] : vector<64x128xf32> to vector<128xf32>
    %123 = vector.shape_cast %122 : vector<128xf32> to vector<1x128xf32>
    %c64_i32_73 = arith.constant 64 : i32
    %124 = tpu.dynamic_rotate %123 by %c64_i32_73 dim 1 : vector<1x128xf32>, i32 -> vector<1x128xf32>
    %125 = arith.addf %123, %124 : vector<1x128xf32>
    %c32_i32_74 = arith.constant 32 : i32
    %126 = tpu.dynamic_rotate %125 by %c32_i32_74 dim 1 : vector<1x128xf32>, i32 -> vector<1x128xf32>
    %127 = arith.addf %125, %126 : vector<1x128xf32>
    %cst_75 = arith.constant 3.906250e-03 : f32
    %128 = vector.broadcast %cst_75 : f32 to vector<1x128xf32>
    %129 = arith.mulf %127, %128 : vector<1x128xf32>
    %c2_76 = arith.constant 2 : index
    %c0_77 = arith.constant 0 : index
    %c0_78 = arith.constant 0 : index
    %130 = vector.load %arg5[%c2_76, %c0_77, %c0_78] : memref<4x1x128xf32, #tpu.memory_space<vmem>>, vector<1x1x128xf32>
    %131 = vector.shape_cast %130 : vector<1x1x128xf32> to vector<1x128xf32>
    %cst_79 = arith.constant 9.99999974E-6 : f32
    %132 = vector.broadcast %cst_79 : f32 to vector<1x128xf32>
    %133 = arith.addf %129, %132 : vector<1x128xf32>
    %134 = math.rsqrt %133 : vector<1x128xf32>
    %135 = arith.mulf %131, %134 : vector<1x128xf32>
    %136 = vector.broadcast %135 : vector<1x128xf32> to vector<64x128xf32>
    %137 = arith.mulf %120, %136 : vector<64x128xf32>
    %c2_80 = arith.constant 2 : index
    %c0_81 = arith.constant 0 : index
    %c0_82 = arith.constant 0 : index
    %138 = vector.load %arg6[%c2_80, %c0_81, %c0_82] : memref<4x1x128xf32, #tpu.memory_space<vmem>>, vector<1x1x128xf32>
    %139 = vector.shape_cast %138 : vector<1x1x128xf32> to vector<1x128xf32>
    %140 = vector.broadcast %139 : vector<1x128xf32> to vector<64x128xf32>
    %141 = arith.addf %137, %140 : vector<64x128xf32>
    %cst_83 = arith.constant 0.000000e+00 : f32
    %142 = vector.broadcast %cst_83 : f32 to vector<64x128xf32>
    %143 = arith.maximumf %141, %142 : vector<64x128xf32>
    %c5 = arith.constant 5 : index
    %c0_84 = arith.constant 0 : index
    %c0_85 = arith.constant 0 : index
    %144 = vector.load %arg3[%c5, %c0_84, %c0_85] : memref<7x128x128xf32, #tpu.memory_space<vmem>>, vector<1x128x128xf32>
    %145 = vector.shape_cast %144 : vector<1x128x128xf32> to vector<128x128xf32>
    %cst_86 = arith.constant dense<0.000000e+00> : vector<64x128xf32>
    %146 = tpu.matmul %143, %145, %cst_86 {dimension_numbers = #tpu.dot_dimension_numbers<[1], [0], [0], [1], [0, 0, 1, 1], [], []>} : vector<64x128xf32>, vector<128x128xf32>, vector<64x128xf32> -> vector<64x128xf32>
    %c5_87 = arith.constant 5 : index
    %c0_88 = arith.constant 0 : index
    %c0_89 = arith.constant 0 : index
    %147 = vector.load %arg4[%c5_87, %c0_88, %c0_89] : memref<7x1x128xf32, #tpu.memory_space<vmem>>, vector<1x1x128xf32>
    %148 = vector.shape_cast %147 : vector<1x1x128xf32> to vector<1x128xf32>
    %149 = vector.broadcast %148 : vector<1x128xf32> to vector<64x128xf32>
    %150 = arith.addf %146, %149 : vector<64x128xf32>
    %cst_90 = arith.constant dense<0.000000e+00> : vector<128xf32>
    %151 = vector.multi_reduction <add>, %150, %cst_90 [0] : vector<64x128xf32> to vector<128xf32>
    %152 = vector.shape_cast %151 : vector<128xf32> to vector<1x128xf32>
    %c64_i32_91 = arith.constant 64 : i32
    %153 = tpu.dynamic_rotate %152 by %c64_i32_91 dim 1 : vector<1x128xf32>, i32 -> vector<1x128xf32>
    %154 = arith.addf %152, %153 : vector<1x128xf32>
    %c32_i32_92 = arith.constant 32 : i32
    %155 = tpu.dynamic_rotate %154 by %c32_i32_92 dim 1 : vector<1x128xf32>, i32 -> vector<1x128xf32>
    %156 = arith.addf %154, %155 : vector<1x128xf32>
    %cst_93 = arith.constant 3.906250e-03 : f32
    %157 = vector.broadcast %cst_93 : f32 to vector<1x128xf32>
    %158 = arith.mulf %156, %157 : vector<1x128xf32>
    %159 = vector.broadcast %158 : vector<1x128xf32> to vector<64x128xf32>
    %160 = arith.subf %150, %159 : vector<64x128xf32>
    %161 = arith.mulf %160, %160 : vector<64x128xf32>
    %cst_94 = arith.constant dense<0.000000e+00> : vector<128xf32>
    %162 = vector.multi_reduction <add>, %161, %cst_94 [0] : vector<64x128xf32> to vector<128xf32>
    %163 = vector.shape_cast %162 : vector<128xf32> to vector<1x128xf32>
    %c64_i32_95 = arith.constant 64 : i32
    %164 = tpu.dynamic_rotate %163 by %c64_i32_95 dim 1 : vector<1x128xf32>, i32 -> vector<1x128xf32>
    %165 = arith.addf %163, %164 : vector<1x128xf32>
    %c32_i32_96 = arith.constant 32 : i32
    %166 = tpu.dynamic_rotate %165 by %c32_i32_96 dim 1 : vector<1x128xf32>, i32 -> vector<1x128xf32>
    %167 = arith.addf %165, %166 : vector<1x128xf32>
    %cst_97 = arith.constant 3.906250e-03 : f32
    %168 = vector.broadcast %cst_97 : f32 to vector<1x128xf32>
    %169 = arith.mulf %167, %168 : vector<1x128xf32>
    %c3_98 = arith.constant 3 : index
    %c0_99 = arith.constant 0 : index
    %c0_100 = arith.constant 0 : index
    %170 = vector.load %arg5[%c3_98, %c0_99, %c0_100] : memref<4x1x128xf32, #tpu.memory_space<vmem>>, vector<1x1x128xf32>
    %171 = vector.shape_cast %170 : vector<1x1x128xf32> to vector<1x128xf32>
    %cst_101 = arith.constant 9.99999974E-6 : f32
    %172 = vector.broadcast %cst_101 : f32 to vector<1x128xf32>
    %173 = arith.addf %169, %172 : vector<1x128xf32>
    %174 = math.rsqrt %173 : vector<1x128xf32>
    %175 = arith.mulf %171, %174 : vector<1x128xf32>
    %176 = vector.broadcast %175 : vector<1x128xf32> to vector<64x128xf32>
    %177 = arith.mulf %160, %176 : vector<64x128xf32>
    %c3_102 = arith.constant 3 : index
    %c0_103 = arith.constant 0 : index
    %c0_104 = arith.constant 0 : index
    %178 = vector.load %arg6[%c3_102, %c0_103, %c0_104] : memref<4x1x128xf32, #tpu.memory_space<vmem>>, vector<1x1x128xf32>
    %179 = vector.shape_cast %178 : vector<1x1x128xf32> to vector<1x128xf32>
    %180 = vector.broadcast %179 : vector<1x128xf32> to vector<64x128xf32>
    %181 = arith.addf %177, %180 : vector<64x128xf32>
    %c6 = arith.constant 6 : index
    %c0_105 = arith.constant 0 : index
    %c0_106 = arith.constant 0 : index
    %182 = vector.load %arg3[%c6, %c0_105, %c0_106] : memref<7x128x128xf32, #tpu.memory_space<vmem>>, vector<1x128x128xf32>
    %183 = vector.shape_cast %182 : vector<1x128x128xf32> to vector<128x128xf32>
    %cst_107 = arith.constant dense<0.000000e+00> : vector<64x128xf32>
    %184 = tpu.matmul %181, %183, %cst_107 {dimension_numbers = #tpu.dot_dimension_numbers<[1], [0], [0], [1], [0, 0, 1, 1], [], []>} : vector<64x128xf32>, vector<128x128xf32>, vector<64x128xf32> -> vector<64x128xf32>
    %c6_108 = arith.constant 6 : index
    %c0_109 = arith.constant 0 : index
    %c0_110 = arith.constant 0 : index
    %185 = vector.load %arg4[%c6_108, %c0_109, %c0_110] : memref<7x1x128xf32, #tpu.memory_space<vmem>>, vector<1x1x128xf32>
    %186 = vector.shape_cast %185 : vector<1x1x128xf32> to vector<1x128xf32>
    %187 = vector.broadcast %186 : vector<1x128xf32> to vector<64x128xf32>
    %188 = arith.addf %184, %187 : vector<64x128xf32>
    %cst_111 = arith.constant 0.000000e+00 : f32
    %189 = vector.broadcast %cst_111 : f32 to vector<64x128xf32>
    %190 = arith.maximumf %188, %189 : vector<64x128xf32>
    %c0_112 = arith.constant 0 : index
    %c0_113 = arith.constant 0 : index
    %191 = vector.load %arg7[%c0_112, %c0_113] : memref<128x4xf32, #tpu.memory_space<vmem>>, vector<128x4xf32>
    %cst_114 = arith.constant dense<0.000000e+00> : vector<64x4xf32>
    %192 = tpu.matmul %190, %191, %cst_114 {dimension_numbers = #tpu.dot_dimension_numbers<[1], [0], [0], [1], [0, 0, 1, 1], [], []>} : vector<64x128xf32>, vector<128x4xf32>, vector<64x4xf32> -> vector<64x4xf32>
    %c0_115 = arith.constant 0 : index
    %c0_116 = arith.constant 0 : index
    %193 = vector.load %arg8[%c0_115, %c0_116] : memref<1x4xf32, #tpu.memory_space<vmem>>, vector<1x4xf32>
    %194 = vector.broadcast %193 : vector<1x4xf32> to vector<64x4xf32>
    %195 = arith.addf %192, %194 : vector<64x4xf32>
    %c0_117 = arith.constant 0 : index
    %c0_118 = arith.constant 0 : index
    %196 = vector.load %arg9[%c0_117, %c0_118] : memref<64x4xf32, #tpu.memory_space<vmem>>, vector<64x4xf32>
    tpu.vector_store %arg9[%c0_117, %c0_118], %195 {strides = array<i32>} : memref<64x4xf32, #tpu.memory_space<vmem>>, vector<64x4xf32>,
    return
  }
}

</mosaic_0001>

<bundles_post_ra>
// kernel: tpu_custom_call.1
= control target key start
LH: loop header
LB: loop body
LE: loop exit
PB: predicated region body
PF: predicated region fallthrough
CT: control target
= control target key end

     0   :  { %14 = vsyncpa [#allocation3], 0  ;;  %s2900_s0 = inlined_call_operand.hbm [shape: f32[64,112], index: 0, kind: input, shape index: {}]   ;;  %s2901_s1 = inlined_call_operand.vmem [shape: f32[112,128], index: 1, kind: input, shape index: {}]   ;;  %s2902_s2 = inlined_call_operand.vmem [shape: f32[1,128], index: 2, kind: input, shape index: {}]   ;;  %s2903_s3 = inlined_call_operand.hbm [shape: f32[7,128,128], index: 3, kind: input, shape index: {}]   ;;  %s2904_s4 = inlined_call_operand.vmem [shape: f32[7,1,128], index: 4, kind: input, shape index: {}]   ;;  %s2905_s5 = inlined_call_operand.vmem [shape: f32[4,1,128], index: 5, kind: input, shape index: {}]   ;;  %s2906_s6 = inlined_call_operand.vmem [shape: f32[4,1,128], index: 6, kind: input, shape index: {}]   ;;  %s2907_s7 = inlined_call_operand.vmem [shape: f32[128,4], index: 7, kind: input, shape index: {}]   ;;  %s2908_s8 = inlined_call_operand.vmem [shape: f32[1,4], index: 8, kind: input, shape index: {}]   ;;  %s2909_s9 = inlined_call_operand.vmem [shape: f32[64,4], index: 9, kind: output, shape index: {}]  }
   0x1   :  { %15 = vsyncpa [#allocation5], 0  ;;  %s2425_s30 = smov [#allocation2]  }
   0x2   :  { %s21_s10 = sshll.u32 %s2425_s30, 4  ;;  %s22_s10 = int_to_ptr.vmem [resolvable:$true] %s21_s10 }
   0x3   :  { %s2389_s11 = scalar_lea.vmem %s22_s10, 1024  ;;  %p2394_p1 = scmp.lt.s32.totalorder %s22_s10, %s22_s10 }
   0x4   :  { %p2390_p0 = scmp.ne.s32.totalorder %s22_s10, %s2389_s11  ;;  %p2395_p2 = scmp.lt.s32.totalorder %s2389_s11, %s2389_s11 }
   0x6   :  { %p2396_p3 = por %p2395_p2, %p2394_p1 }
   0x8   :  { %p2397_p4 = pnand %p2396_p3, %p2390_p0 }
   0xa   :  { %2400 = shalt.err (!%p2397_p4)
}
   0xb   :  { %s2426_s12 = smov 128   ;;  %s2427_s13 = smov 8  }
   0xc   :  { %27 = dma.hbm_to_vmem [thread:$0]  %s2900_s0, 1024, %s22_s10, [#allocation3], %s2426_s12, %s2426_s12, %s2427_s13  }
   0xd   :  { %s2428_s16 = smov [#allocation4]  }
   0xe   :  { %s37_s17 = sshll.u32 %s2428_s16, 4  ;;  %s38_s17 = int_to_ptr.vmem [resolvable:$true] %s37_s17 }
   0xf   :  { %s2409_s18 = scalar_lea.vmem %s38_s17, 14336  ;;  %p2414_p6 = scmp.lt.s32.totalorder %s38_s17, %s38_s17 }
  0x10   :  { %p2410_p5 = scmp.ne.s32.totalorder %s38_s17, %s2409_s18  ;;  %p2415_p7 = scmp.lt.s32.totalorder %s2409_s18, %s2409_s18 }
  0x12   :  { %p2416_p8 = por %p2415_p7, %p2414_p6 }
  0x14   :  { %p2417_p9 = pnand %p2416_p8, %p2410_p5 }
  0x16   :  { %2420 = shalt.err (!%p2417_p9)
}
  0x17   :  { %43 = dma.hbm_to_vmem [thread:$0]  %s2903_s3, 14336, %s38_s17, [#allocation5], %s2426_s12, %s2426_s12, %s2427_s13  }
  0x18   :  { %2421 = dma.done.wait [#allocation3], 1024  }
  0x19   :  { %2422 = vsyncadd [#allocation3], 4294966272 }
  0x1a   :  { %2423 = dma.done.wait [#allocation5], 14336  }
  0x1b   :  { %2424 = vsyncadd [#allocation5], 4294952960  ;;  %v81_v0 = vld [vmem:[%s2901_s1 + $0x68] sm:$0xff]  ;;  %v80_v1 = vld [vmem:[%s2901_s1 + $0x60] sm:$0xff]  ;;  %vm89_vm0 = vcmask 916480   ;;  %s2429_s30 = smov 64  }
  0x1c   :  { %1943 = vmatprep.subr.mxu0 %v81_v0  ;;  %v79_v2 = vld [vmem:[%s2901_s1 + $0x58] sm:$0xff]  ;;  %v78_v3 = vld [vmem:[%s2901_s1 + $0x50] sm:$0xff]  ;;  %v60_v4 = vld [vmem:[#allocation2] sm:$0xff]  ;;  %s2430_s10 = smov 32   ;;  %vm1681_vm1 = vcmask 31744  }
  0x1d   :  { %1944 = vmatpush3.msra.mxu0 %v81_v0  ;;  %1971 = vmatprep.mubr.msk.f32.mxu0 %vm89_vm0, %v60_v4  ;;  %v77_v5 = vld [vmem:[%s2901_s1 + $0x48] sm:$0xff]  ;;  %v242_v6 = vld [vmem:[#allocation4 + $0x78] sm:$0xff]  ;;  %v241_v7 = vld [vmem:[#allocation4 + $0x70] sm:$0xff] }
  0x1e   :  { %1945 = vmatprep.subr.mxu0 %v80_v1  ;;  %v76_v8 = vld [vmem:[%s2901_s1 + $0x40] sm:$0xff]  ;;  %1983 = vmatprep.subr.mxu1 %v242_v6  ;;  %v240_v9 = vld [vmem:[#allocation4 + $0x68] sm:$0xff]  ;;  %v75_v10 = vld [vmem:[%s2901_s1 + $0x38] sm:$0xff] }
  0x1f   :  { %1946 = vmatpush3.msra.mxu0 %v80_v1  ;;  %1984 = vmatpush3.msra.mxu1 %v242_v6  ;;  %v239_v11 = vld [vmem:[#allocation4 + $0x60] sm:$0xff]  ;;  %v74_v12 = vld [vmem:[%s2901_s1 + $0x30] sm:$0xff]  ;;  %v238_v13 = vld [vmem:[#allocation4 + $0x58] sm:$0xff] }
  0x20   :  { %1947 = vmatprep.subr.mxu0 %v79_v2  ;;  %1985 = vmatprep.subr.mxu1 %v241_v7  ;;  %v73_v14 = vld [vmem:[%s2901_s1 + $0x28] sm:$0xff]  ;;  %v237_v15 = vld [vmem:[#allocation4 + $0x50] sm:$0xff]  ;;  %v72_v16 = vld [vmem:[%s2901_s1 + $0x20] sm:$0xff] }
  0x21   :  { %1948 = vmatpush3.msra.mxu0 %v79_v2  ;;  %1986 = vmatpush3.msra.mxu1 %v241_v7  ;;  %v236_v17 = vld [vmem:[#allocation4 + $0x48] sm:$0xff]  ;;  %v71_v18 = vld [vmem:[%s2901_s1 + $0x18] sm:$0xff]  ;;  %v235_v19 = vld [vmem:[#allocation4 + $0x40] sm:$0xff] }
  0x22   :  { %1949 = vmatprep.subr.mxu0 %v78_v3  ;;  %1987 = vmatprep.subr.mxu1 %v240_v9  ;;  %v70_v20 = vld [vmem:[%s2901_s1 + $0x10] sm:$0xff]  ;;  %v234_v21 = vld [vmem:[#allocation4 + $0x38] sm:$0xff]  ;;  %v69_v22 = vld [vmem:[%s2901_s1 + $0x8] sm:$0xff] }
  0x23   :  { %1950 = vmatpush3.msra.mxu0 %v78_v3  ;;  %1988 = vmatpush3.msra.mxu1 %v240_v9  ;;  %v233_v23 = vld [vmem:[#allocation4 + $0x30] sm:$0xff]  ;;  %v68_v24 = vld [vmem:[%s2901_s1] sm:$0xff]  ;;  %v232_v25 = vld [vmem:[#allocation4 + $0x28] sm:$0xff] }
  0x24   :  { %1951 = vmatprep.subr.mxu0 %v77_v5  ;;  %1989 = vmatprep.subr.mxu1 %v239_v11  ;;  %v61_v26 = vld [vmem:[#allocation2 + $0x8] sm:$0xff]  ;;  %v62_v27 = vld [vmem:[#allocation2 + $0x10] sm:$0xff]  ;;  %v231_v28 = vld [vmem:[#allocation4 + $0x20] sm:$0xff] }
  0x25   :  { %1952 = vmatpush3.msra.mxu0 %v77_v5  ;;  %1990 = vmatpush3.msra.mxu1 %v239_v11  ;;  %v63_v29 = vld [vmem:[#allocation2 + $0x18] sm:$0xff]  ;;  %v64_v30 = vld [vmem:[#allocation2 + $0x20] sm:$0xff]  ;;  %v65_v31 = vld [vmem:[#allocation2 + $0x28] sm:$0xff] }
  0x26   :  { %1953 = vmatprep.subr.mxu0 %v76_v8  ;;  %1991 = vmatprep.subr.mxu1 %v238_v13  ;;  %v66_v32 = vld [vmem:[#allocation2 + $0x30] sm:$0xff]  ;;  %v67_v33 = vld [vmem:[#allocation2 + $0x38] sm:$0xff]  ;;  %v228_v36 = vld [vmem:[#allocation4 + $0x8] sm:$0xff] }
  0x27   :  { %1954 = vmatpush3.msra.mxu0 %v76_v8  ;;  %1992 = vmatpush3.msra.mxu1 %v238_v13  ;;  %v230_v34 = vld [vmem:[#allocation4 + $0x18] sm:$0xff]  ;;  %v229_v35 = vld [vmem:[#allocation4 + $0x10] sm:$0xff]  ;;  %v227_v37 = vld [vmem:[#allocation4] sm:$0xff] }
  0x28   :  { %1955 = vmatprep.subr.mxu0 %v75_v10  ;;  %1993 = vmatprep.subr.mxu1 %v237_v15  ;;  %v379_v38 = vld [vmem:[#allocation4 + $0xf8] sm:$0xff]  ;;  %v378_v39 = vld [vmem:[#allocation4 + $0xf0] sm:$0xff]  ;;  %v377_v40 = vld [vmem:[#allocation4 + $0xe8] sm:$0xff] }
  0x29   :  { %1956 = vmatpush3.msra.mxu0 %v75_v10  ;;  %1994 = vmatpush3.msra.mxu1 %v237_v15  ;;  %v376_v41 = vld [vmem:[#allocation4 + $0xe0] sm:$0xff]  ;;  %v375_v42 = vld [vmem:[#allocation4 + $0xd8] sm:$0xff]  ;;  %v374_v43 = vld [vmem:[#allocation4 + $0xd0] sm:$0xff] }
  0x2a   :  { %1957 = vmatprep.subr.mxu0 %v74_v12  ;;  %1995 = vmatprep.subr.mxu1 %v236_v17  ;;  %v373_v44 = vld [vmem:[#allocation4 + $0xc8] sm:$0xff]  ;;  %v372_v45 = vld [vmem:[#allocation4 + $0xc0] sm:$0xff]  ;;  %v371_v46 = vld [vmem:[#allocation4 + $0xb8] sm:$0xff] }
  0x2b   :  { %1958 = vmatpush3.msra.mxu0 %v74_v12  ;;  %1996 = vmatpush3.msra.mxu1 %v236_v17  ;;  %v370_v47 = vld [vmem:[#allocation4 + $0xb0] sm:$0xff]  ;;  %v369_v48 = vld [vmem:[#allocation4 + $0xa8] sm:$0xff]  ;;  %v368_v49 = vld [vmem:[#allocation4 + $0xa0] sm:$0xff] }
  0x2c   :  { %1959 = vmatprep.subr.mxu0 %v73_v14  ;;  %1997 = vmatprep.subr.mxu1 %v235_v19  ;;  %v1696_v50 = vld [vmem:[%s2902_s2] ss:$0 sm:$0xff]  ;;  %v367_v11 = vld [vmem:[#allocation4 + $0x98] sm:$0xff]  ;;  %v366_v12 = vld [vmem:[#allocation4 + $0x90] sm:$0xff] }
  0x2d   :  { %1960 = vmatpush3.msra.mxu0 %v73_v14  ;;  %1998 = vmatpush3.msra.mxu1 %v235_v19  ;;  %v365_v13 = vld [vmem:[#allocation4 + $0x88] sm:$0xff]  ;;  %v364_v14 = vld [vmem:[#allocation4 + $0x80] sm:$0xff]  ;;  %v509_v15 = vld [vmem:[#allocation4 + $0x178] sm:$0xff] }
  0x2e   :  { %1961 = vmatprep.subr.mxu0 %v72_v16  ;;  %1999 = vmatprep.subr.mxu1 %v234_v21  ;;  %v507_v17 = vld [vmem:[#allocation4 + $0x168] sm:$0xff]  ;;  %v505_v19 = vld [vmem:[#allocation4 + $0x158] sm:$0xff] }
  0x2f   :  { %1962 = vmatpush3.msra.mxu0 %v72_v16  ;;  %2000 = vmatpush3.msra.mxu1 %v234_v21  ;;  %v508_v16 = vld [vmem:[#allocation4 + $0x170] sm:$0xff]  ;;  %v503_v21 = vld [vmem:[#allocation4 + $0x148] sm:$0xff] }
  0x30   :  { %1963 = vmatprep.subr.mxu0 %v71_v18  ;;  %2001 = vmatprep.subr.mxu1 %v233_v23 }
  0x31   :  { %1964 = vmatpush3.msra.mxu0 %v71_v18  ;;  %2002 = vmatpush3.msra.mxu1 %v233_v23  ;;  %v506_v18 = vld [vmem:[#allocation4 + $0x160] sm:$0xff]  ;;  %v501_v23 = vld [vmem:[#allocation4 + $0x138] sm:$0xff] }
  0x32   :  { %1965 = vmatprep.subr.mxu0 %v70_v20  ;;  %2003 = vmatprep.subr.mxu1 %v232_v25 }
  0x33   :  { %1966 = vmatpush3.msra.mxu0 %v70_v20  ;;  %2004 = vmatpush3.msra.mxu1 %v232_v25  ;;  %v504_v20 = vld [vmem:[#allocation4 + $0x150] sm:$0xff]  ;;  %v499_v25 = vld [vmem:[#allocation4 + $0x128] sm:$0xff] }
  0x34   :  { %1967 = vmatprep.subr.mxu0 %v69_v22  ;;  %2005 = vmatprep.subr.mxu1 %v231_v28 }
  0x35   :  { %1968 = vmatpush3.msra.mxu0 %v69_v22  ;;  %2006 = vmatpush3.msra.mxu1 %v231_v28  ;;  %v502_v22 = vld [vmem:[#allocation4 + $0x140] sm:$0xff] }
  0x36   :  { %1969 = vmatprep.subr.mxu0 %v68_v24  ;;  %2007 = vmatprep.subr.mxu1 %v230_v34  ;;  %v1705_v28 = vld [vmem:[%s2904_s4] ss:$0 sm:$0xff] }
  0x37   :  { %1970 = vmatpush3.msra.mxu0 %v68_v24  ;;  %2008 = vmatpush3.msra.mxu1 %v230_v34  ;;  %v500_v24 = vld [vmem:[#allocation4 + $0x130] sm:$0xff] }
  0x38   :  { %1972 = vmatmul.mubr.msk.f32.vlgmr.msra.gmra.mxu0 %vm89_vm0, %v61_v26  ;;  %2009 = vmatprep.subr.mxu1 %v229_v35  ;;  %v498_v26 = vld [vmem:[#allocation4 + $0x120] sm:$0xff] }
  0x39   :  { %1974 = vmatprep.mubr.msk.f32.mxu0 %vm89_vm0, %v62_v27  ;;  %2010 = vmatpush3.msra.mxu1 %v229_v35  ;;  %v497_v27 = vld [vmem:[#allocation4 + $0x118] sm:$0xff] }
  0x3a   :  { %2011 = vmatprep.subr.mxu1 %v228_v36  ;;  %2027 = vmatprep.subr.mxu0 %v379_v38 }
  0x3b   :  { %2012 = vmatpush3.msra.mxu1 %v228_v36  ;;  %2028 = vmatpush3.msra.mxu0 %v379_v38 }
  0x3c   :  { %1975 = vmatmul.mubr.msk.f32.gmra.mxu0 %vm89_vm0, %v63_v29  ;;  %2013 = vmatprep.subr.mxu1 %v227_v37 }
  0x3d   :  { %1977 = vmatprep.mubr.msk.f32.mxu0 %vm89_vm0, %v64_v30  ;;  %2014 = vmatpush3.msra.mxu1 %v227_v37 }
  0x3e   :  { %2029 = vmatprep.subr.mxu0 %v378_v39  ;;  %2071 = vmatprep.subr.mxu1 %v509_v15 }
  0x3f   :  { %2030 = vmatpush3.msra.mxu0 %v378_v39 }
  0x40   :  { %1978 = vmatmul.mubr.msk.f32.gmra.mxu0 %vm89_vm0, %v65_v31  ;;  %2031 = vmatprep.subr.mxu0 %v377_v40 }
  0x41   :  { %1980 = vmatprep.mubr.msk.f32.mxu0 %vm89_vm0, %v66_v32  ;;  %2032 = vmatpush3.msra.mxu0 %v377_v40 }
  0x42   :  { %2033 = vmatprep.subr.mxu0 %v376_v41 }
  0x43   :  { %2034 = vmatpush3.msra.mxu0 %v376_v41 }
  0x44   :  { %1981 = vmatmul.mubr.msk.f32.gmra.mxu0 %vm89_vm0, %v67_v33  ;;  %2035 = vmatprep.subr.mxu0 %v375_v42 }
  0x45   :  { %2036 = vmatpush3.msra.mxu0 %v375_v42 }
  0x46   :  { %2037 = vmatprep.subr.mxu0 %v374_v43 }
  0x47   :  { %2038 = vmatpush3.msra.mxu0 %v374_v43 }
  0x48   :  { %2039 = vmatprep.subr.mxu0 %v373_v44 }
  0x49   :  { %2040 = vmatpush3.msra.mxu0 %v373_v44 }
  0x4a   :  { %2041 = vmatprep.subr.mxu0 %v372_v45 }
  0x4b   :  { %2042 = vmatpush3.msra.mxu0 %v372_v45 }
  0x4c   :  { %2043 = vmatprep.subr.mxu0 %v371_v46 }
  0x4d   :  { %2044 = vmatpush3.msra.mxu0 %v371_v46 }
  0x4e   :  { %2045 = vmatprep.subr.mxu0 %v370_v47 }
  0x4f   :  { %2046 = vmatpush3.msra.mxu0 %v370_v47 }
  0x50   :  { %2047 = vmatprep.subr.mxu0 %v369_v48 }
  0x51   :  { %2048 = vmatpush3.msra.mxu0 %v369_v48 }
  0x52   :  { %2049 = vmatprep.subr.mxu0 %v368_v49 }
  0x53   :  { %2050 = vmatpush3.msra.mxu0 %v368_v49 }
  0x54   :  { %2051 = vmatprep.subr.mxu0 %v367_v11 }
  0x55   :  { %2052 = vmatpush3.msra.mxu0 %v367_v11 }
  0x56   :  { %2053 = vmatprep.subr.mxu0 %v366_v12 }
  0x57   :  { %2054 = vmatpush3.msra.mxu0 %v366_v12 }
  0x58   :  { %2055 = vmatprep.subr.mxu0 %v365_v13 }
  0x59   :  { %2056 = vmatpush3.msra.mxu0 %v365_v13 }
  0x5a   :  { %2057 = vmatprep.subr.mxu0 %v364_v14 }
  0x5b   :  { %2058 = vmatpush3.msra.mxu0 %v364_v14 }
  0xf8   :  { %v1973_v51 = vpop.f32.mrf.mxu0 }
  0xf9   :  { %v186_v52 = vadd.f32 %v1973_v51, %v1696_v50 }
  0xfa   :  { %v180_v53 = vpop.f32.mrf.mxu0 }
  0xfb   :  { %v181_v54 = vadd.f32 %v1696_v50, %v180_v53  ;;  %v220_v57 = vmax.f32 %v186_v52, 0.0  ;;  %v496_v53 = vld [vmem:[#allocation4 + $0x110] sm:$0xff] }
  0xfc   :  { %v1976_v55 = vpop.f32.mrf.mxu0 }
  0xfd   :  { %v219_v56 = vmax.f32 %v181_v54, 0.0  ;;  %v196_v58 = vadd.f32 %v1976_v55, %v1696_v50  ;;  %v495_v54 = vld [vmem:[#allocation4 + $0x108] sm:$0xff]  ;;  %v494_v55 = vld [vmem:[#allocation4 + $0x100] sm:$0xff] }
  0xfe   :  { %v190_v59 = vpop.f32.mrf.mxu0 }
  0xff   :  { %v191_v60 = vadd.f32 %v1696_v50, %v190_v59  ;;  %2015 = vmatprep.mubr.f32.mxu1 %v219_v56  ;;  %v222_v63 = vmax.f32 %v196_v58, 0.0 }
 0x100   :  { %v1979_v61 = vpop.f32.mrf.mxu0  ;;  %2016 = vmatmul.mubr.f32.vlgmr.msra.gmra.mxu1 %v220_v57  ;;  %v1707_v57 = vld [vmem:[%s2904_s4 + $0x1] ss:$0 sm:$0xff] }
 0x101   :  { %v221_v62 = vmax.f32 %v191_v60, 0.0  ;;  %v206_v0 = vadd.f32 %v1979_v61, %v1696_v50  ;;  %2072 = vmatpush3.msra.mxu1 %v509_v15 }
 0x102   :  { %v200_v1 = vpop.f32.mrf.mxu0  ;;  %2073 = vmatprep.subr.mxu1 %v508_v16 }
 0x103   :  { %v201_v2 = vadd.f32 %v1696_v50, %v200_v1  ;;  %2018 = vmatprep.mubr.f32.mxu1 %v221_v62  ;;  %v224_v5 = vmax.f32 %v206_v0, 0.0  ;;  %2074 = vmatpush3.msra.mxu1 %v508_v16 }
 0x104   :  { %v1982_v3 = vpop.f32.mrf.mxu0  ;;  %2019 = vmatmul.mubr.f32.gmra.mxu1 %v222_v63  ;;  %2075 = vmatprep.subr.mxu1 %v507_v17 }
 0x105   :  { %v223_v4 = vmax.f32 %v201_v2, 0.0  ;;  %v216_v6 = vadd.f32 %v1982_v3, %v1696_v50  ;;  %2076 = vmatpush3.msra.mxu1 %v507_v17 }
 0x106   :  { %v210_v7 = vpop.f32.mrf.mxu0  ;;  %2077 = vmatprep.subr.mxu1 %v506_v18 }
 0x107   :  { %v211_v8 = vadd.f32 %v1696_v50, %v210_v7  ;;  %2021 = vmatprep.mubr.f32.mxu1 %v223_v4  ;;  %v226_v10 = vmax.f32 %v216_v6, 0.0  ;;  %2078 = vmatpush3.msra.mxu1 %v506_v18 }
 0x108   :  { %2022 = vmatmul.mubr.f32.gmra.mxu1 %v224_v5  ;;  %2079 = vmatprep.subr.mxu1 %v505_v19 }
 0x109   :  { %v225_v9 = vmax.f32 %v211_v8, 0.0  ;;  %2080 = vmatpush3.msra.mxu1 %v505_v19 }
 0x10a   :  { %2081 = vmatprep.subr.mxu1 %v504_v20 }
 0x10b   :  { %2024 = vmatprep.mubr.f32.mxu1 %v225_v9  ;;  %2082 = vmatpush3.msra.mxu1 %v504_v20 }
 0x10c   :  { %2025 = vmatmul.mubr.f32.gmra.mxu1 %v226_v10  ;;  %2083 = vmatprep.subr.mxu1 %v503_v21  ;;  %v1709_v10 = vld [vmem:[%s2904_s4 + $0x2] ss:$0 sm:$0xff] }
 0x10d   :  { %2084 = vmatpush3.msra.mxu1 %v503_v21 }
 0x10e   :  { %2085 = vmatprep.subr.mxu1 %v502_v22 }
 0x10f   :  { %2086 = vmatpush3.msra.mxu1 %v502_v22 }
 0x110   :  { %2087 = vmatprep.subr.mxu1 %v501_v23 }
 0x111   :  { %2088 = vmatpush3.msra.mxu1 %v501_v23 }
 0x112   :  { %2089 = vmatprep.subr.mxu1 %v500_v24 }
 0x113   :  { %2090 = vmatpush3.msra.mxu1 %v500_v24 }
 0x114   :  { %2091 = vmatprep.subr.mxu1 %v499_v25 }
 0x115   :  { %2092 = vmatpush3.msra.mxu1 %v499_v25 }
 0x116   :  { %2093 = vmatprep.subr.mxu1 %v498_v26 }
 0x117   :  { %2094 = vmatpush3.msra.mxu1 %v498_v26 }
 0x118   :  { %2095 = vmatprep.subr.mxu1 %v497_v27 }
 0x119   :  { %2096 = vmatpush3.msra.mxu1 %v497_v27 }
 0x11a   :  { %2097 = vmatprep.subr.mxu1 %v496_v53 }
 0x11b   :  { %2098 = vmatpush3.msra.mxu1 %v496_v53 }
 0x11c   :  { %2099 = vmatprep.subr.mxu1 %v495_v54 }
 0x11d   :  { %2100 = vmatpush3.msra.mxu1 %v495_v54 }
 0x11e   :  { %2101 = vmatprep.subr.mxu1 %v494_v55 }
 0x11f   :  { %2102 = vmatpush3.msra.mxu1 %v494_v55 }
 0x1c0   :  { %v2017_v29 = vpop.f32.mrf.mxu1 }
 0x1c1   :  { %v322_v30 = vadd.f32 %v2017_v29, %v1705_v28 }
 0x1c2   :  { %v316_v31 = vpop.f32.mrf.mxu1 }
 0x1c3   :  { %v317_v32 = vadd.f32 %v1705_v28, %v316_v31  ;;  %v356_v35 = vmax.f32 %v322_v30, 0.0 }
 0x1c4   :  { %v2020_v33 = vpop.f32.mrf.mxu1 }
 0x1c5   :  { %v355_v34 = vmax.f32 %v317_v32, 0.0  ;;  %v332_v36 = vadd.f32 %v2020_v33, %v1705_v28 }
 0x1c6   :  { %v326_v37 = vpop.f32.mrf.mxu1 }
 0x1c7   :  { %v327_v38 = vadd.f32 %v1705_v28, %v326_v37  ;;  %2059 = vmatprep.mubr.f32.mxu0 %v355_v34  ;;  %v358_v41 = vmax.f32 %v332_v36, 0.0 }
 0x1c8   :  { %v2023_v39 = vpop.f32.mrf.mxu1  ;;  %2060 = vmatmul.mubr.f32.vlgmr.msra.gmra.mxu0 %v356_v35 }
 0x1c9   :  { %v357_v40 = vmax.f32 %v327_v38, 0.0  ;;  %v342_v42 = vadd.f32 %v2023_v39, %v1705_v28 }
 0x1ca   :  { %v336_v43 = vpop.f32.mrf.mxu1 }
 0x1cb   :  { %v337_v44 = vadd.f32 %v1705_v28, %v336_v43  ;;  %2062 = vmatprep.mubr.f32.mxu0 %v357_v40  ;;  %v360_v47 = vmax.f32 %v342_v42, 0.0 }
 0x1cc   :  { %v2026_v45 = vpop.f32.mrf.mxu1  ;;  %2063 = vmatmul.mubr.f32.gmra.mxu0 %v358_v41  ;;  %v643_v41 = vlaneseq }
 0x1cd   :  { %v359_v46 = vmax.f32 %v337_v44, 0.0  ;;  %v352_v48 = vadd.f32 %v2026_v45, %v1705_v28 }
 0x1ce   :  { %v346_v49 = vpop.f32.mrf.mxu1  ;;  %v644_v42 = vshrl.u32 %v643_v41, 7 }
 0x1cf   :  { %v347_v50 = vadd.f32 %v1705_v28, %v346_v49  ;;  %2065 = vmatprep.mubr.f32.mxu0 %v359_v46  ;;  %v362_v52 = vmax.f32 %v352_v48, 0.0 }
 0x1d0   :  { %2066 = vmatmul.mubr.f32.gmra.mxu0 %v360_v47  ;;  %v2551_v44 = vsub.s32 0, %v644_v42 }
 0x1d1   :  { %v361_v51 = vmax.f32 %v347_v50, 0.0 }
 0x1d3   :  { %2068 = vmatprep.mubr.f32.mxu0 %v361_v51 }
 0x1d4   :  { %2069 = vmatmul.mubr.f32.gmra.mxu0 %v362_v52 }
 0x288   :  { %v2061_v56 = vpop.f32.mrf.mxu0 }
 0x289   :  { %v460_v60 = vadd.f32 %v2061_v56, %v1707_v57 }
 0x28a   :  { %v454_v58 = vpop.f32.mrf.mxu0 }
 0x28b   :  { %v455_v59 = vadd.f32 %v1707_v57, %v454_v58 }
 0x28c   :  { %v2064_v61 = vpop.f32.mrf.mxu0 }
 0x28d   :  { %2103 = vmatprep.mubr.f32.mxu1 %v455_v59  ;;  %v470_v0 = vadd.f32 %v2064_v61, %v1707_v57 }
 0x28e   :  { %v464_v62 = vpop.f32.mrf.mxu0  ;;  %2104 = vmatmul.mubr.f32.vlgmr.msra.gmra.mxu1 %v460_v60 }
 0x28f   :  { %v465_v63 = vadd.f32 %v1707_v57, %v464_v62 }
 0x290   :  { %v2067_v1 = vpop.f32.mrf.mxu0 }
 0x291   :  { %2106 = vmatprep.mubr.f32.mxu1 %v465_v63  ;;  %v480_v4 = vadd.f32 %v2067_v1, %v1707_v57 }
 0x292   :  { %v474_v2 = vpop.f32.mrf.mxu0  ;;  %2107 = vmatmul.mubr.f32.gmra.mxu1 %v470_v0 }
 0x293   :  { %v475_v3 = vadd.f32 %v1707_v57, %v474_v2 }
 0x294   :  { %v2070_v5 = vpop.f32.mrf.mxu0 }
 0x295   :  { %2109 = vmatprep.mubr.f32.mxu1 %v475_v3  ;;  %v490_v8 = vadd.f32 %v2070_v5, %v1707_v57 }
 0x296   :  { %v484_v6 = vpop.f32.mrf.mxu0  ;;  %2110 = vmatmul.mubr.f32.gmra.mxu1 %v480_v4 }
 0x297   :  { %v485_v7 = vadd.f32 %v1707_v57, %v484_v6 }
 0x299   :  { %2112 = vmatprep.mubr.f32.mxu1 %v485_v7 }
 0x29a   :  { %2113 = vmatmul.mubr.f32.gmra.mxu1 %v490_v8  ;;  %v740_v8 = vld [vmem:[#allocation4 + $0x1f8] sm:$0xff] }
 0x29b   :  { %2115 = vmatprep.subr.mxu0 %v740_v8 }
 0x29c   :  { %2116 = vmatpush3.msra.mxu0 %v740_v8 }
 0x34e   :  { %v2105_v9 = vpop.f32.mrf.mxu1 }
 0x34f   :  { %v590_v14 = vadd.f32 %v2105_v9, %v1709_v10 }
 0x350   :  { %v584_v11 = vpop.f32.mrf.mxu1 }
 0x351   :  { %v585_v12 = vadd.f32 %v1709_v10, %v584_v11 }
 0x352   :  { %v2108_v13 = vpop.f32.mrf.mxu1 }
 0x353   :  { %v623_v16 = vadd.f32 %v590_v14, %v585_v12  ;;  %v600_v19 = vadd.f32 %v2108_v13, %v1709_v10 }
 0x354   :  { %v594_v15 = vpop.f32.mrf.mxu1 }
 0x355   :  { %v595_v17 = vadd.f32 %v1709_v10, %v594_v15  ;;  %v738_v15 = vld [vmem:[#allocation4 + $0x1e8] sm:$0xff] }
 0x356   :  { %v2111_v18 = vpop.f32.mrf.mxu1 }
 0x357   :  { %v624_v20 = vadd.f32 %v623_v16, %v595_v17  ;;  %v610_v25 = vadd.f32 %v2111_v18, %v1709_v10  ;;  %v737_v16 = vld [vmem:[#allocation4 + $0x1e0] sm:$0xff]  ;;  %v735_v18 = vld [vmem:[#allocation4 + $0x1d0] sm:$0xff] }
 0x358   :  { %v604_v21 = vpop.f32.mrf.mxu1 }
 0x359   :  { %v605_v22 = vadd.f32 %v1709_v10, %v604_v21  ;;  %v625_v23 = vadd.f32 %v624_v20, %v600_v19  ;;  %v734_v21 = vld [vmem:[#allocation4 + $0x1c8] sm:$0xff] }
 0x35a   :  { %v2114_v24 = vpop.f32.mrf.mxu1 }
 0x35b   :  { %v626_v26 = vadd.f32 %v625_v23, %v605_v22  ;;  %v620_v30 = vadd.f32 %v2114_v24, %v1709_v10  ;;  %v732_v23 = vld [vmem:[#allocation4 + $0x1b8] sm:$0xff]  ;;  %v731_v24 = vld [vmem:[#allocation4 + $0x1b0] sm:$0xff] }
 0x35c   :  { %v614_v27 = vpop.f32.mrf.mxu1 }
 0x35d   :  { %v615_v28 = vadd.f32 %v1709_v10, %v614_v27  ;;  %v627_v29 = vadd.f32 %v626_v26, %v610_v25  ;;  %v729_v26 = vld [vmem:[#allocation4 + $0x1a0] sm:$0xff]  ;;  %v728_v27 = vld [vmem:[#allocation4 + $0x198] sm:$0xff] }
 0x35f   :  { %v628_v31 = vadd.f32 %v627_v29, %v615_v28  ;;  %v726_v29 = vld [vmem:[#allocation4 + $0x188] sm:$0xff] }
 0x361   :  { %v629_v32 = vadd.f32 %v628_v31, %v620_v30 }
 0x363   :  { %v630_v33 = vrot.slane %v629_v32, 4 }
 0x365   :  { %v631_v34 = vadd.f32 %v630_v33, %v629_v32 }
 0x367   :  { %v632_v35 = vrot.slane %v631_v34, 2 }
 0x369   :  { %v633_v36 = vadd.f32 %v632_v35, %v631_v34  ;;  %v683_v35 = vld [vmem:[%s2905_s5] sm:$0x1] }
 0x36b   :  { %v634_v37 = vrot.slane %v633_v36, 1 }
 0x36d   :  { %v635_v38 = vadd.f32 %v634_v37, %v633_v36 }
 0x36f   :  { %636 = vrot.lane.b32.xlu0 %v635_v38, %s2429_s30 }
 0x3e1   :  { %v637_v39 = vpop.permute.xlu0 %636 }
 0x3e2   :  { %v638_v40 = vadd.f32 %v637_v39, %v635_v38  ;;  %v1710_v39 = vld [vmem:[%s2906_s6] ss:$0 sm:$0xff] }
 0x3e4   :  { %639 = vrot.lane.b32.xlu0 %v638_v40, %s2430_s10 }
 0x456   :  { %v640_v43 = vpop.permute.xlu0 %639 }
 0x457   :  { %v641_v45 = vadd.f32 %v640_v43, %v638_v40 }
 0x459   :  { %v642_v46 = vmul.f32 0.00390625, %v641_v45 }
 0x45b   :  { %v646_v47 = vrot.slane %v642_v46, %v2551_v44 }
 0x45d   :  { %v2554_v48 = vsub.f32 %v585_v12, %v646_v47  ;;  %v2556_v49 = vsub.f32 %v590_v14, %v646_v47  ;;  %v2558_v50 = vsub.f32 %v595_v17, %v646_v47  ;;  %v2560_v51 = vsub.f32 %v600_v19, %v646_v47  ;;  %v739_v14 = vld [vmem:[#allocation4 + $0x1f0] sm:$0xff]  ;;  %v736_v17 = vld [vmem:[#allocation4 + $0x1d8] sm:$0xff] }
 0x45e   :  { %v2566_v54 = vsub.f32 %v605_v22, %v646_v47  ;;  %v2570_v57 = vsub.f32 %v610_v25, %v646_v47  ;;  %v2574_v60 = vsub.f32 %v615_v28, %v646_v47  ;;  %v2578_v63 = vsub.f32 %v620_v30, %v646_v47  ;;  %2117 = vmatprep.subr.mxu0 %v739_v14  ;;  %v733_v22 = vld [vmem:[#allocation4 + $0x1c0] sm:$0xff]  ;;  %v730_v25 = vld [vmem:[#allocation4 + $0x1a8] sm:$0xff]  ;;  %v727_v28 = vld [vmem:[#allocation4 + $0x190] sm:$0xff] }
 0x45f   :  { %v655_v52 = vmul.f32 %v2554_v48, %v2554_v48  ;;  %v656_v53 = vmul.f32 %v2556_v49, %v2556_v49  ;;  %v657_v55 = vmul.f32 %v2558_v50, %v2558_v50  ;;  %v658_v58 = vmul.f32 %v2560_v51, %v2560_v51  ;;  %2118 = vmatpush3.msra.mxu0 %v739_v14  ;;  %v725_v30 = vld [vmem:[#allocation4 + $0x180] sm:$0xff] }
 0x460   :  { %v659_v61 = vmul.f32 %v2566_v54, %v2566_v54  ;;  %v660_v0 = vmul.f32 %v2570_v57, %v2570_v57  ;;  %v661_v2 = vmul.f32 %v2574_v60, %v2574_v60  ;;  %v662_v4 = vmul.f32 %v2578_v63, %v2578_v63  ;;  %2119 = vmatprep.subr.mxu0 %v738_v15 }
 0x461   :  { %v663_v56 = vadd.f32 %v656_v53, %v655_v52  ;;  %2120 = vmatpush3.msra.mxu0 %v738_v15 }
 0x462   :  { %2121 = vmatprep.subr.mxu0 %v737_v16 }
 0x463   :  { %v664_v59 = vadd.f32 %v663_v56, %v657_v55  ;;  %2122 = vmatpush3.msra.mxu0 %v737_v16 }
 0x464   :  { %2123 = vmatprep.subr.mxu0 %v736_v17 }
 0x465   :  { %v665_v62 = vadd.f32 %v664_v59, %v658_v58  ;;  %2124 = vmatpush3.msra.mxu0 %v736_v17 }
 0x466   :  { %2125 = vmatprep.subr.mxu0 %v735_v18 }
 0x467   :  { %v666_v1 = vadd.f32 %v665_v62, %v659_v61  ;;  %2126 = vmatpush3.msra.mxu0 %v735_v18 }
 0x468   :  { %2127 = vmatprep.subr.mxu0 %v734_v21 }
 0x469   :  { %v667_v3 = vadd.f32 %v666_v1, %v660_v0  ;;  %2128 = vmatpush3.msra.mxu0 %v734_v21 }
 0x46a   :  { %2129 = vmatprep.subr.mxu0 %v733_v22 }
 0x46b   :  { %v668_v5 = vadd.f32 %v667_v3, %v661_v2  ;;  %2130 = vmatpush3.msra.mxu0 %v733_v22 }
 0x46c   :  { %2131 = vmatprep.subr.mxu0 %v732_v23 }
 0x46d   :  { %v669_v6 = vadd.f32 %v668_v5, %v662_v4  ;;  %2132 = vmatpush3.msra.mxu0 %v732_v23 }
 0x46e   :  { %2133 = vmatprep.subr.mxu0 %v731_v24 }
 0x46f   :  { %v670_v7 = vrot.slane %v669_v6, 4  ;;  %2134 = vmatpush3.msra.mxu0 %v731_v24 }
 0x470   :  { %2135 = vmatprep.subr.mxu0 %v730_v25 }
 0x471   :  { %v671_v9 = vadd.f32 %v670_v7, %v669_v6  ;;  %2136 = vmatpush3.msra.mxu0 %v730_v25 }
 0x472   :  { %2137 = vmatprep.subr.mxu0 %v729_v26 }
 0x473   :  { %v672_v10 = vrot.slane %v671_v9, 2  ;;  %2138 = vmatpush3.msra.mxu0 %v729_v26 }
 0x474   :  { %2139 = vmatprep.subr.mxu0 %v728_v27 }
 0x475   :  { %v673_v11 = vadd.f32 %v672_v10, %v671_v9  ;;  %2140 = vmatpush3.msra.mxu0 %v728_v27 }
 0x476   :  { %2141 = vmatprep.subr.mxu0 %v727_v28 }
 0x477   :  { %v674_v12 = vrot.slane %v673_v11, 1  ;;  %2142 = vmatpush3.msra.mxu0 %v727_v28 }
 0x478   :  { %2143 = vmatprep.subr.mxu0 %v726_v29 }
 0x479   :  { %v675_v13 = vadd.f32 %v674_v12, %v673_v11  ;;  %2144 = vmatpush3.msra.mxu0 %v726_v29 }
 0x47a   :  { %2145 = vmatprep.subr.mxu0 %v725_v30 }
 0x47b   :  { %676 = vrot.lane.b32.xlu1 %v675_v13, %s2429_s30  ;;  %2146 = vmatpush3.msra.mxu0 %v725_v30 }
 0x4ed   :  { %v677_v19 = vpop.permute.xlu1 %676 }
 0x4ee   :  { %v678_v20 = vadd.f32 %v677_v19, %v675_v13 }
 0x4f0   :  { %679 = vrot.lane.b32.xlu1 %v678_v20, %s2430_s10 }
 0x562   :  { %v680_v31 = vpop.permute.xlu1 %679 }
 0x563   :  { %v681_v32 = vadd.f32 %v680_v31, %v678_v20 }
 0x565   :  { %v682_v33 = vmul.f32 0.00390625, %v681_v32 }
 0x567   :  { %v684_v34 = vadd.f32 1e-05, %v682_v33 }
 0x569   :  { %2373 = vrsqrt.f32 %v684_v34 }
 0x576   :  { %v2374_v36 = vpop.eup %2373 }
 0x577   :  { %v686_v37 = vmul.f32 %v2374_v36, %v683_v35 }
 0x579   :  { %v691_v38 = vrot.slane %v686_v37, %v2551_v44 }
 0x57b   :  { %v693_v40 = vmul.f32 %v691_v38, %v2554_v48  ;;  %v694_v41 = vmul.f32 %v691_v38, %v2556_v49  ;;  %v695_v42 = vmul.f32 %v691_v38, %v2558_v50  ;;  %v696_v43 = vmul.f32 %v691_v38, %v2560_v51 }
 0x57c   :  { %v697_v52 = vmul.f32 %v691_v38, %v2566_v54  ;;  %v698_v58 = vmul.f32 %v691_v38, %v2570_v57  ;;  %v699_v48 = vmul.f32 %v691_v38, %v2574_v60  ;;  %v700_v51 = vmul.f32 %v691_v38, %v2578_v63  ;;  %v1712_v60 = vld [vmem:[%s2904_s4 + $0x3] ss:$0 sm:$0xff] }
 0x57d   :  { %v708_v45 = vadd.f32 %v1710_v39, %v693_v40  ;;  %v709_v46 = vadd.f32 %v1710_v39, %v694_v41  ;;  %v710_v47 = vadd.f32 %v1710_v39, %v695_v42  ;;  %v711_v56 = vadd.f32 %v1710_v39, %v696_v43 }
 0x57e   :  { %v712_v61 = vadd.f32 %v1710_v39, %v697_v52  ;;  %v713_v50 = vadd.f32 %v1710_v39, %v698_v58  ;;  %v714_v0 = vadd.f32 %v1710_v39, %v699_v48  ;;  %v715_v1 = vadd.f32 %v1710_v39, %v700_v51 }
 0x57f   :  { %v716_v53 = vmax.f32 %v708_v45, 0.0  ;;  %v717_v55 = vmax.f32 %v709_v46, 0.0  ;;  %v718_v59 = vmax.f32 %v710_v47, 0.0  ;;  %v719_v49 = vmax.f32 %v711_v56, 0.0 }
 0x580   :  { %v720_v62 = vmax.f32 %v712_v61, 0.0  ;;  %v721_v54 = vmax.f32 %v713_v50, 0.0  ;;  %v722_v2 = vmax.f32 %v714_v0, 0.0  ;;  %v723_v57 = vmax.f32 %v715_v1, 0.0  ;;  %v973_v1 = vld [vmem:[#allocation4 + $0x278] sm:$0xff] }
 0x581   :  { %2147 = vmatprep.mubr.f32.mxu0 %v716_v53  ;;  %2159 = vmatprep.subr.mxu1 %v973_v1 }
 0x582   :  { %2148 = vmatmul.mubr.f32.vlgmr.msra.gmra.mxu0 %v717_v55  ;;  %2160 = vmatpush3.msra.mxu1 %v973_v1 }
 0x583   :  { %2150 = vmatprep.mubr.f32.mxu0 %v718_v59 }
 0x586   :  { %2151 = vmatmul.mubr.f32.gmra.mxu0 %v719_v49 }
 0x587   :  { %2153 = vmatprep.mubr.f32.mxu0 %v720_v62 }
 0x58a   :  { %2154 = vmatmul.mubr.f32.gmra.mxu0 %v721_v54 }
 0x58b   :  { %2156 = vmatprep.mubr.f32.mxu0 %v722_v2 }
 0x58e   :  { %2157 = vmatmul.mubr.f32.gmra.mxu0 %v723_v57 }
 0x642   :  { %v2149_v3 = vpop.f32.mrf.mxu0 }
 0x643   :  { %v821_v63 = vadd.f32 %v2149_v3, %v1712_v60 }
 0x644   :  { %v815_v4 = vpop.f32.mrf.mxu0 }
 0x645   :  { %v816_v5 = vadd.f32 %v1712_v60, %v815_v4 }
 0x646   :  { %v2152_v6 = vpop.f32.mrf.mxu0 }
 0x647   :  { %v854_v8 = vadd.f32 %v821_v63, %v816_v5  ;;  %v831_v11 = vadd.f32 %v2152_v6, %v1712_v60  ;;  %v971_v6 = vld [vmem:[#allocation4 + $0x268] sm:$0xff] }
 0x648   :  { %v825_v7 = vpop.f32.mrf.mxu0 }
 0x649   :  { %v826_v9 = vadd.f32 %v1712_v60, %v825_v7  ;;  %v969_v7 = vld [vmem:[#allocation4 + $0x258] sm:$0xff] }
 0x64a   :  { %v2155_v10 = vpop.f32.mrf.mxu0 }
 0x64b   :  { %v855_v12 = vadd.f32 %v854_v8, %v826_v9  ;;  %v841_v17 = vadd.f32 %v2155_v10, %v1712_v60  ;;  %v968_v8 = vld [vmem:[#allocation4 + $0x250] sm:$0xff] }
 0x64c   :  { %v835_v13 = vpop.f32.mrf.mxu0 }
 0x64d   :  { %v836_v14 = vadd.f32 %v1712_v60, %v835_v13  ;;  %v856_v15 = vadd.f32 %v855_v12, %v831_v11  ;;  %v966_v12 = vld [vmem:[#allocation4 + $0x240] sm:$0xff]  ;;  %v965_v13 = vld [vmem:[#allocation4 + $0x238] sm:$0xff] }
 0x64e   :  { %v2158_v16 = vpop.f32.mrf.mxu0 }
 0x64f   :  { %v857_v18 = vadd.f32 %v856_v15, %v836_v14  ;;  %v851_v22 = vadd.f32 %v2158_v16, %v1712_v60  ;;  %v963_v15 = vld [vmem:[#allocation4 + $0x228] sm:$0xff]  ;;  %v962_v16 = vld [vmem:[#allocation4 + $0x220] sm:$0xff] }
 0x650   :  { %v845_v19 = vpop.f32.mrf.mxu0 }
 0x651   :  { %v846_v20 = vadd.f32 %v1712_v60, %v845_v19  ;;  %v858_v21 = vadd.f32 %v857_v18, %v841_v17  ;;  %v960_v18 = vld [vmem:[#allocation4 + $0x210] sm:$0xff]  ;;  %v959_v19 = vld [vmem:[#allocation4 + $0x208] sm:$0xff] }
 0x653   :  { %v859_v23 = vadd.f32 %v858_v21, %v846_v20 }
 0x655   :  { %v860_v24 = vadd.f32 %v859_v23, %v851_v22 }
 0x657   :  { %v861_v25 = vrot.slane %v860_v24, 4 }
 0x659   :  { %v862_v26 = vadd.f32 %v861_v25, %v860_v24  ;;  %v1713_v25 = vld [vmem:[%s2905_s5 + $0x1] sm:$0x1] }
 0x65b   :  { %v863_v27 = vrot.slane %v862_v26, 2 }
 0x65d   :  { %v864_v28 = vadd.f32 %v863_v27, %v862_v26 }
 0x65f   :  { %v865_v29 = vrot.slane %v864_v28, 1 }
 0x661   :  { %v866_v30 = vadd.f32 %v865_v29, %v864_v28  ;;  %v1715_v29 = vld [vmem:[%s2906_s6 + $0x1] ss:$0 sm:$0xff] }
 0x663   :  { %867 = vrot.lane.b32.xlu0 %v866_v30, %s2429_s30 }
 0x6d5   :  { %v868_v31 = vpop.permute.xlu0 %867 }
 0x6d6   :  { %v869_v32 = vadd.f32 %v868_v31, %v866_v30 }
 0x6d8   :  { %870 = vrot.lane.b32.xlu1 %v869_v32, %s2430_s10 }
 0x74a   :  { %v871_v33 = vpop.permute.xlu1 %870 }
 0x74b   :  { %v872_v34 = vadd.f32 %v871_v33, %v869_v32 }
 0x74d   :  { %v873_v35 = vmul.f32 0.00390625, %v872_v34 }
 0x74f   :  { %v877_v36 = vrot.slane %v873_v35, %v2551_v44 }
 0x751   :  { %v2609_v37 = vsub.f32 %v816_v5, %v877_v36  ;;  %v2611_v38 = vsub.f32 %v821_v63, %v877_v36  ;;  %v2613_v39 = vsub.f32 %v826_v9, %v877_v36  ;;  %v2615_v40 = vsub.f32 %v831_v11, %v877_v36  ;;  %v972_v5 = vld [vmem:[#allocation4 + $0x270] sm:$0xff]  ;;  %v970_v63 = vld [vmem:[#allocation4 + $0x260] sm:$0xff]  ;;  %v967_v11 = vld [vmem:[#allocation4 + $0x248] sm:$0xff] }
 0x752   :  { %v2621_v43 = vsub.f32 %v836_v14, %v877_v36  ;;  %v2625_v47 = vsub.f32 %v841_v17, %v877_v36  ;;  %v2629_v55 = vsub.f32 %v846_v20, %v877_v36  ;;  %v2633_v59 = vsub.f32 %v851_v22, %v877_v36  ;;  %2161 = vmatprep.subr.mxu1 %v972_v5  ;;  %v964_v14 = vld [vmem:[#allocation4 + $0x230] sm:$0xff]  ;;  %v961_v17 = vld [vmem:[#allocation4 + $0x218] sm:$0xff]  ;;  %v958_v20 = vld [vmem:[#allocation4 + $0x200] sm:$0xff] }
 0x753   :  { %v886_v41 = vmul.f32 %v2609_v37, %v2609_v37  ;;  %v887_v42 = vmul.f32 %v2611_v38, %v2611_v38  ;;  %v888_v45 = vmul.f32 %v2613_v39, %v2613_v39  ;;  %v889_v52 = vmul.f32 %v2615_v40, %v2615_v40  ;;  %2162 = vmatpush3.msra.mxu1 %v972_v5 }
 0x754   :  { %v890_v56 = vmul.f32 %v2621_v43, %v2621_v43  ;;  %v891_v61 = vmul.f32 %v2625_v47, %v2625_v47  ;;  %v892_v49 = vmul.f32 %v2629_v55, %v2629_v55  ;;  %v893_v51 = vmul.f32 %v2633_v59, %v2633_v59  ;;  %2163 = vmatprep.subr.mxu1 %v971_v6 }
 0x755   :  { %v894_v46 = vadd.f32 %v887_v42, %v886_v41  ;;  %2164 = vmatpush3.msra.mxu1 %v971_v6 }
 0x756   :  { %2165 = vmatprep.subr.mxu1 %v970_v63 }
 0x757   :  { %v895_v53 = vadd.f32 %v894_v46, %v888_v45  ;;  %2166 = vmatpush3.msra.mxu1 %v970_v63 }
 0x758   :  { %2167 = vmatprep.subr.mxu1 %v969_v7 }
 0x759   :  { %v896_v58 = vadd.f32 %v895_v53, %v889_v52  ;;  %2168 = vmatpush3.msra.mxu1 %v969_v7 }
 0x75a   :  { %2169 = vmatprep.subr.mxu1 %v968_v8 }
 0x75b   :  { %v897_v48 = vadd.f32 %v896_v58, %v890_v56  ;;  %2170 = vmatpush3.msra.mxu1 %v968_v8 }
 0x75c   :  { %2171 = vmatprep.subr.mxu1 %v967_v11 }
 0x75d   :  { %v898_v50 = vadd.f32 %v897_v48, %v891_v61  ;;  %2172 = vmatpush3.msra.mxu1 %v967_v11 }
 0x75e   :  { %2173 = vmatprep.subr.mxu1 %v966_v12 }
 0x75f   :  { %v899_v62 = vadd.f32 %v898_v50, %v892_v49  ;;  %2174 = vmatpush3.msra.mxu1 %v966_v12 }
 0x760   :  { %2175 = vmatprep.subr.mxu1 %v965_v13 }
 0x761   :  { %v900_v0 = vadd.f32 %v899_v62, %v893_v51  ;;  %2176 = vmatpush3.msra.mxu1 %v965_v13 }
 0x762   :  { %2177 = vmatprep.subr.mxu1 %v964_v14 }
 0x763   :  { %v901_v54 = vrot.slane %v900_v0, 4  ;;  %2178 = vmatpush3.msra.mxu1 %v964_v14 }
 0x764   :  { %2179 = vmatprep.subr.mxu1 %v963_v15 }
 0x765   :  { %v902_v2 = vadd.f32 %v901_v54, %v900_v0  ;;  %2180 = vmatpush3.msra.mxu1 %v963_v15 }
 0x766   :  { %2181 = vmatprep.subr.mxu1 %v962_v16 }
 0x767   :  { %v903_v57 = vrot.slane %v902_v2, 2  ;;  %2182 = vmatpush3.msra.mxu1 %v962_v16 }
 0x768   :  { %2183 = vmatprep.subr.mxu1 %v961_v17 }
 0x769   :  { %v904_v3 = vadd.f32 %v903_v57, %v902_v2  ;;  %2184 = vmatpush3.msra.mxu1 %v961_v17 }
 0x76a   :  { %2185 = vmatprep.subr.mxu1 %v960_v18 }
 0x76b   :  { %v905_v60 = vrot.slane %v904_v3, 1  ;;  %2186 = vmatpush3.msra.mxu1 %v960_v18 }
 0x76c   :  { %2187 = vmatprep.subr.mxu1 %v959_v19 }
 0x76d   :  { %v906_v4 = vadd.f32 %v905_v60, %v904_v3  ;;  %2188 = vmatpush3.msra.mxu1 %v959_v19 }
 0x76e   :  { %2189 = vmatprep.subr.mxu1 %v958_v20 }
 0x76f   :  { %907 = vrot.lane.b32.xlu0 %v906_v4, %s2429_s30  ;;  %2190 = vmatpush3.msra.mxu1 %v958_v20 }
 0x7e1   :  { %v908_v9 = vpop.permute.xlu0 %907 }
 0x7e2   :  { %v909_v10 = vadd.f32 %v908_v9, %v906_v4 }
 0x7e4   :  { %910 = vrot.lane.b32.xlu1 %v909_v10, %s2430_s10 }
 0x856   :  { %v911_v21 = vpop.permute.xlu1 %910 }
 0x857   :  { %v912_v22 = vadd.f32 %v911_v21, %v909_v10 }
 0x859   :  { %v913_v23 = vmul.f32 0.00390625, %v912_v22 }
 0x85b   :  { %v916_v24 = vadd.f32 1e-05, %v913_v23 }
 0x85d   :  { %2375 = vrsqrt.f32 %v916_v24 }
 0x86a   :  { %v2376_v26 = vpop.eup %2375 }
 0x86b   :  { %v918_v27 = vmul.f32 %v2376_v26, %v1713_v25 }
 0x86d   :  { %v923_v28 = vrot.slane %v918_v27, %v2551_v44 }
 0x86f   :  { %v925_v30 = vmul.f32 %v923_v28, %v2609_v37  ;;  %v926_v31 = vmul.f32 %v923_v28, %v2611_v38  ;;  %v927_v32 = vmul.f32 %v923_v28, %v2613_v39  ;;  %v928_v33 = vmul.f32 %v923_v28, %v2615_v40 }
 0x870   :  { %v929_v41 = vmul.f32 %v923_v28, %v2621_v43  ;;  %v930_v52 = vmul.f32 %v923_v28, %v2625_v47  ;;  %v931_v37 = vmul.f32 %v923_v28, %v2629_v55  ;;  %v932_v40 = vmul.f32 %v923_v28, %v2633_v59  ;;  %v1717_v55 = vld [vmem:[%s2904_s4 + $0x4] ss:$0 sm:$0xff] }
 0x871   :  { %v941_v34 = vadd.f32 %v1715_v29, %v925_v30  ;;  %v942_v35 = vadd.f32 %v1715_v29, %v926_v31  ;;  %v943_v36 = vadd.f32 %v1715_v29, %v927_v32  ;;  %v944_v46 = vadd.f32 %v1715_v29, %v928_v33 }
 0x872   :  { %v945_v56 = vadd.f32 %v1715_v29, %v929_v41  ;;  %v946_v39 = vadd.f32 %v1715_v29, %v930_v52  ;;  %v947_v61 = vadd.f32 %v1715_v29, %v931_v37  ;;  %v948_v48 = vadd.f32 %v1715_v29, %v932_v40 }
 0x873   :  { %v949_v42 = vmax.f32 %v941_v34, 0.0  ;;  %v950_v45 = vmax.f32 %v942_v35, 0.0  ;;  %v951_v53 = vmax.f32 %v943_v36, 0.0  ;;  %v952_v38 = vmax.f32 %v944_v46, 0.0 }
 0x874   :  { %v953_v58 = vmax.f32 %v945_v56, 0.0  ;;  %v954_v43 = vmax.f32 %v946_v39, 0.0  ;;  %v955_v49 = vmax.f32 %v947_v61, 0.0  ;;  %v956_v47 = vmax.f32 %v948_v48, 0.0  ;;  %v1206_v48 = vld [vmem:[#allocation4 + $0x2f8] sm:$0xff] }
 0x875   :  { %2191 = vmatprep.mubr.f32.mxu1 %v949_v42  ;;  %2203 = vmatprep.subr.mxu0 %v1206_v48 }
 0x876   :  { %2192 = vmatmul.mubr.f32.vlgmr.msra.gmra.mxu1 %v950_v45  ;;  %2204 = vmatpush3.msra.mxu0 %v1206_v48 }
 0x877   :  { %2194 = vmatprep.mubr.f32.mxu1 %v951_v53 }
 0x87a   :  { %2195 = vmatmul.mubr.f32.gmra.mxu1 %v952_v38 }
 0x87b   :  { %2197 = vmatprep.mubr.f32.mxu1 %v953_v58 }
 0x87e   :  { %2198 = vmatmul.mubr.f32.gmra.mxu1 %v954_v43 }
 0x87f   :  { %2200 = vmatprep.mubr.f32.mxu1 %v955_v49 }
 0x882   :  { %2201 = vmatmul.mubr.f32.gmra.mxu1 %v956_v47 }
 0x936   :  { %v2193_v50 = vpop.f32.mrf.mxu1 }
 0x937   :  { %v1054_v59 = vadd.f32 %v2193_v50, %v1717_v55 }
 0x938   :  { %v1048_v51 = vpop.f32.mrf.mxu1 }
 0x939   :  { %v1049_v62 = vadd.f32 %v1717_v55, %v1048_v51 }
 0x93a   :  { %v2196_v0 = vpop.f32.mrf.mxu1 }
 0x93b   :  { %v1087_v1 = vadd.f32 %v1054_v59, %v1049_v62  ;;  %v1064_v3 = vadd.f32 %v2196_v0, %v1717_v55  ;;  %v1204_v0 = vld [vmem:[#allocation4 + $0x2e8] sm:$0xff] }
 0x93c   :  { %v1058_v54 = vpop.f32.mrf.mxu1 }
 0x93d   :  { %v1059_v2 = vadd.f32 %v1717_v55, %v1058_v54  ;;  %v1202_v54 = vld [vmem:[#allocation4 + $0x2d8] sm:$0xff] }
 0x93e   :  { %v2199_v57 = vpop.f32.mrf.mxu1 }
 0x93f   :  { %v1088_v60 = vadd.f32 %v1087_v1, %v1059_v2  ;;  %v1074_v7 = vadd.f32 %v2199_v57, %v1717_v55  ;;  %v1201_v1 = vld [vmem:[#allocation4 + $0x2d0] sm:$0xff] }
 0x940   :  { %v1068_v4 = vpop.f32.mrf.mxu1 }
 0x941   :  { %v1069_v5 = vadd.f32 %v1717_v55, %v1068_v4  ;;  %v1089_v6 = vadd.f32 %v1088_v60, %v1064_v3  ;;  %v1199_v60 = vld [vmem:[#allocation4 + $0x2c0] sm:$0xff]  ;;  %v1198_v4 = vld [vmem:[#allocation4 + $0x2b8] sm:$0xff] }
 0x942   :  { %v2202_v63 = vpop.f32.mrf.mxu1 }
 0x943   :  { %v1090_v8 = vadd.f32 %v1089_v6, %v1069_v5  ;;  %v1084_v12 = vadd.f32 %v2202_v63, %v1717_v55  ;;  %v1196_v6 = vld [vmem:[#allocation4 + $0x2a8] sm:$0xff]  ;;  %v1195_v63 = vld [vmem:[#allocation4 + $0x2a0] sm:$0xff] }
 0x944   :  { %v1078_v9 = vpop.f32.mrf.mxu1 }
 0x945   :  { %v1079_v10 = vadd.f32 %v1717_v55, %v1078_v9  ;;  %v1091_v11 = vadd.f32 %v1090_v8, %v1074_v7  ;;  %v1193_v8 = vld [vmem:[#allocation4 + $0x290] sm:$0xff]  ;;  %v1192_v9 = vld [vmem:[#allocation4 + $0x288] sm:$0xff] }
 0x947   :  { %v1092_v13 = vadd.f32 %v1091_v11, %v1079_v10 }
 0x949   :  { %v1093_v14 = vadd.f32 %v1092_v13, %v1084_v12 }
 0x94b   :  { %v1094_v15 = vrot.slane %v1093_v14, 4 }
 0x94d   :  { %v1095_v16 = vadd.f32 %v1094_v15, %v1093_v14  ;;  %v1718_v15 = vld [vmem:[%s2905_s5 + $0x2] sm:$0x1] }
 0x94f   :  { %v1096_v17 = vrot.slane %v1095_v16, 2 }
 0x951   :  { %v1097_v18 = vadd.f32 %v1096_v17, %v1095_v16 }
 0x953   :  { %v1098_v19 = vrot.slane %v1097_v18, 1 }
 0x955   :  { %v1099_v20 = vadd.f32 %v1098_v19, %v1097_v18  ;;  %v1720_v19 = vld [vmem:[%s2906_s6 + $0x2] ss:$0 sm:$0xff] }
 0x957   :  { %1100 = vrot.lane.b32.xlu0 %v1099_v20, %s2429_s30 }
 0x9c9   :  { %v1101_v21 = vpop.permute.xlu0 %1100 }
 0x9ca   :  { %v1102_v22 = vadd.f32 %v1101_v21, %v1099_v20 }
 0x9cc   :  { %1103 = vrot.lane.b32.xlu1 %v1102_v22, %s2430_s10 }
 0xa3e   :  { %v1104_v23 = vpop.permute.xlu1 %1103 }
 0xa3f   :  { %v1105_v24 = vadd.f32 %v1104_v23, %v1102_v22 }
 0xa41   :  { %v1106_v25 = vmul.f32 0.00390625, %v1105_v24 }
 0xa43   :  { %v1110_v26 = vrot.slane %v1106_v25, %v2551_v44 }
 0xa45   :  { %v2664_v27 = vsub.f32 %v1049_v62, %v1110_v26  ;;  %v2666_v28 = vsub.f32 %v1054_v59, %v1110_v26  ;;  %v2668_v29 = vsub.f32 %v1059_v2, %v1110_v26  ;;  %v2670_v30 = vsub.f32 %v1064_v3, %v1110_v26  ;;  %v1205_v62 = vld [vmem:[#allocation4 + $0x2f0] sm:$0xff]  ;;  %v1203_v59 = vld [vmem:[#allocation4 + $0x2e0] sm:$0xff]  ;;  %v1200_v3 = vld [vmem:[#allocation4 + $0x2c8] sm:$0xff] }
 0xa46   :  { %v2676_v33 = vsub.f32 %v1069_v5, %v1110_v26  ;;  %v2680_v36 = vsub.f32 %v1074_v7, %v1110_v26  ;;  %v2684_v45 = vsub.f32 %v1079_v10, %v1110_v26  ;;  %v2688_v53 = vsub.f32 %v1084_v12, %v1110_v26  ;;  %2205 = vmatprep.subr.mxu0 %v1205_v62  ;;  %v1197_v5 = vld [vmem:[#allocation4 + $0x2b0] sm:$0xff]  ;;  %v1194_v7 = vld [vmem:[#allocation4 + $0x298] sm:$0xff]  ;;  %v1191_v10 = vld [vmem:[#allocation4 + $0x280] sm:$0xff] }
 0xa47   :  { %v1119_v31 = vmul.f32 %v2664_v27, %v2664_v27  ;;  %v1120_v32 = vmul.f32 %v2666_v28, %v2666_v28  ;;  %v1121_v34 = vmul.f32 %v2668_v29, %v2668_v29  ;;  %v1122_v41 = vmul.f32 %v2670_v30, %v2670_v30  ;;  %2206 = vmatpush3.msra.mxu0 %v1205_v62 }
 0xa48   :  { %v1123_v46 = vmul.f32 %v2676_v33, %v2676_v33  ;;  %v1124_v56 = vmul.f32 %v2680_v36, %v2680_v36  ;;  %v1125_v38 = vmul.f32 %v2684_v45, %v2684_v45  ;;  %v1126_v40 = vmul.f32 %v2688_v53, %v2688_v53  ;;  %2207 = vmatprep.subr.mxu0 %v1204_v0 }
 0xa49   :  { %v1127_v35 = vadd.f32 %v1120_v32, %v1119_v31  ;;  %2208 = vmatpush3.msra.mxu0 %v1204_v0 }
 0xa4a   :  { %2209 = vmatprep.subr.mxu0 %v1203_v59 }
 0xa4b   :  { %v1128_v42 = vadd.f32 %v1127_v35, %v1121_v34  ;;  %2210 = vmatpush3.msra.mxu0 %v1203_v59 }
 0xa4c   :  { %2211 = vmatprep.subr.mxu0 %v1202_v54 }
 0xa4d   :  { %v1129_v52 = vadd.f32 %v1128_v42, %v1122_v41  ;;  %2212 = vmatpush3.msra.mxu0 %v1202_v54 }
 0xa4e   :  { %2213 = vmatprep.subr.mxu0 %v1201_v1 }
 0xa4f   :  { %v1130_v37 = vadd.f32 %v1129_v52, %v1123_v46  ;;  %2214 = vmatpush3.msra.mxu0 %v1201_v1 }
 0xa50   :  { %2215 = vmatprep.subr.mxu0 %v1200_v3 }
 0xa51   :  { %v1131_v39 = vadd.f32 %v1130_v37, %v1124_v56  ;;  %2216 = vmatpush3.msra.mxu0 %v1200_v3 }
 0xa52   :  { %2217 = vmatprep.subr.mxu0 %v1199_v60 }
 0xa53   :  { %v1132_v58 = vadd.f32 %v1131_v39, %v1125_v38  ;;  %2218 = vmatpush3.msra.mxu0 %v1199_v60 }
 0xa54   :  { %2219 = vmatprep.subr.mxu0 %v1198_v4 }
 0xa55   :  { %v1133_v61 = vadd.f32 %v1132_v58, %v1126_v40  ;;  %2220 = vmatpush3.msra.mxu0 %v1198_v4 }
 0xa56   :  { %2221 = vmatprep.subr.mxu0 %v1197_v5 }
 0xa57   :  { %v1134_v43 = vrot.slane %v1133_v61, 4  ;;  %2222 = vmatpush3.msra.mxu0 %v1197_v5 }
 0xa58   :  { %2223 = vmatprep.subr.mxu0 %v1196_v6 }
 0xa59   :  { %v1135_v49 = vadd.f32 %v1134_v43, %v1133_v61  ;;  %2224 = vmatpush3.msra.mxu0 %v1196_v6 }
 0xa5a   :  { %2225 = vmatprep.subr.mxu0 %v1195_v63 }
 0xa5b   :  { %v1136_v47 = vrot.slane %v1135_v49, 2  ;;  %2226 = vmatpush3.msra.mxu0 %v1195_v63 }
 0xa5c   :  { %2227 = vmatprep.subr.mxu0 %v1194_v7 }
 0xa5d   :  { %v1137_v50 = vadd.f32 %v1136_v47, %v1135_v49  ;;  %2228 = vmatpush3.msra.mxu0 %v1194_v7 }
 0xa5e   :  { %2229 = vmatprep.subr.mxu0 %v1193_v8 }
 0xa5f   :  { %v1138_v55 = vrot.slane %v1137_v50, 1  ;;  %2230 = vmatpush3.msra.mxu0 %v1193_v8 }
 0xa60   :  { %2231 = vmatprep.subr.mxu0 %v1192_v9 }
 0xa61   :  { %v1139_v51 = vadd.f32 %v1138_v55, %v1137_v50  ;;  %2232 = vmatpush3.msra.mxu0 %v1192_v9 }
 0xa62   :  { %2233 = vmatprep.subr.mxu0 %v1191_v10 }
 0xa63   :  { %1140 = vrot.lane.b32.xlu0 %v1139_v51, %s2429_s30  ;;  %2234 = vmatpush3.msra.mxu0 %v1191_v10 }
 0xad5   :  { %v1141_v2 = vpop.permute.xlu0 %1140 }
 0xad6   :  { %v1142_v57 = vadd.f32 %v1141_v2, %v1139_v51 }
 0xad8   :  { %1143 = vrot.lane.b32.xlu1 %v1142_v57, %s2430_s10 }
 0xb4a   :  { %v1144_v11 = vpop.permute.xlu1 %1143 }
 0xb4b   :  { %v1145_v12 = vadd.f32 %v1144_v11, %v1142_v57 }
 0xb4d   :  { %v1146_v13 = vmul.f32 0.00390625, %v1145_v12 }
 0xb4f   :  { %v1149_v14 = vadd.f32 1e-05, %v1146_v13 }
 0xb51   :  { %2377 = vrsqrt.f32 %v1149_v14 }
 0xb5e   :  { %v2378_v16 = vpop.eup %2377 }
 0xb5f   :  { %v1151_v17 = vmul.f32 %v2378_v16, %v1718_v15 }
 0xb61   :  { %v1156_v18 = vrot.slane %v1151_v17, %v2551_v44 }
 0xb63   :  { %v1158_v20 = vmul.f32 %v1156_v18, %v2664_v27  ;;  %v1159_v21 = vmul.f32 %v1156_v18, %v2666_v28  ;;  %v1160_v22 = vmul.f32 %v1156_v18, %v2668_v29  ;;  %v1161_v23 = vmul.f32 %v1156_v18, %v2670_v30 }
 0xb64   :  { %v1162_v31 = vmul.f32 %v1156_v18, %v2676_v33  ;;  %v1163_v41 = vmul.f32 %v1156_v18, %v2680_v36  ;;  %v1164_v27 = vmul.f32 %v1156_v18, %v2684_v45  ;;  %v1165_v30 = vmul.f32 %v1156_v18, %v2688_v53  ;;  %v1722_v45 = vld [vmem:[%s2904_s4 + $0x5] ss:$0 sm:$0xff] }
 0xb65   :  { %v1174_v24 = vadd.f32 %v1720_v19, %v1158_v20  ;;  %v1175_v25 = vadd.f32 %v1720_v19, %v1159_v21  ;;  %v1176_v26 = vadd.f32 %v1720_v19, %v1160_v22  ;;  %v1177_v35 = vadd.f32 %v1720_v19, %v1161_v23 }
 0xb66   :  { %v1178_v46 = vadd.f32 %v1720_v19, %v1162_v31  ;;  %v1179_v29 = vadd.f32 %v1720_v19, %v1163_v41  ;;  %v1180_v56 = vadd.f32 %v1720_v19, %v1164_v27  ;;  %v1181_v37 = vadd.f32 %v1720_v19, %v1165_v30 }
 0xb67   :  { %v1182_v32 = vmax.f32 %v1174_v24, 0.0  ;;  %v1183_v34 = vmax.f32 %v1175_v25, 0.0  ;;  %v1184_v42 = vmax.f32 %v1176_v26, 0.0  ;;  %v1185_v28 = vmax.f32 %v1177_v35, 0.0 }
 0xb68   :  { %v1186_v52 = vmax.f32 %v1178_v46, 0.0  ;;  %v1187_v33 = vmax.f32 %v1179_v29, 0.0  ;;  %v1188_v38 = vmax.f32 %v1180_v56, 0.0  ;;  %v1189_v36 = vmax.f32 %v1181_v37, 0.0  ;;  %v1431_v37 = vld [vmem:[#allocation4 + $0x378] sm:$0xff] }
 0xb69   :  { %2235 = vmatprep.mubr.f32.mxu0 %v1182_v32  ;;  %2247 = vmatprep.subr.mxu1 %v1431_v37 }
 0xb6a   :  { %2236 = vmatmul.mubr.f32.vlgmr.msra.gmra.mxu0 %v1183_v34  ;;  %2248 = vmatpush3.msra.mxu1 %v1431_v37  ;;  %v1727_v37 = vld [vmem:[%s2904_s4 + $0x6] ss:$0 sm:$0xff] }
 0xb6b   :  { %2238 = vmatprep.mubr.f32.mxu0 %v1184_v42 }
 0xb6e   :  { %2239 = vmatmul.mubr.f32.gmra.mxu0 %v1185_v28 }
 0xb6f   :  { %2241 = vmatprep.mubr.f32.mxu0 %v1186_v52 }
 0xb72   :  { %2242 = vmatmul.mubr.f32.gmra.mxu0 %v1187_v33 }
 0xb73   :  { %2244 = vmatprep.mubr.f32.mxu0 %v1188_v38  ;;  %v1430_v38 = vld [vmem:[#allocation4 + $0x370] sm:$0xff] }
 0xb74   :  { %2249 = vmatprep.subr.mxu1 %v1430_v38 }
 0xb75   :  { %2250 = vmatpush3.msra.mxu1 %v1430_v38 }
 0xb76   :  { %2245 = vmatmul.mubr.f32.gmra.mxu0 %v1189_v36 }
 0xc2a   :  { %v2237_v39 = vpop.f32.mrf.mxu0 }
 0xc2b   :  { %v1287_v53 = vadd.f32 %v2237_v39, %v1722_v45 }
 0xc2c   :  { %v1281_v40 = vpop.f32.mrf.mxu0 }
 0xc2d   :  { %v1282_v58 = vadd.f32 %v1722_v45, %v1281_v40 }
 0xc2e   :  { %v2240_v61 = vpop.f32.mrf.mxu0 }
 0xc2f   :  { %v1320_v48 = vadd.f32 %v1287_v53, %v1282_v58  ;;  %v1297_v50 = vadd.f32 %v2240_v61, %v1722_v45  ;;  %v1429_v61 = vld [vmem:[#allocation4 + $0x368] sm:$0xff] }
 0xc30   :  { %v1291_v43 = vpop.f32.mrf.mxu0  ;;  %2251 = vmatprep.subr.mxu1 %v1429_v61 }
 0xc31   :  { %v1292_v49 = vadd.f32 %v1722_v45, %v1291_v43  ;;  %2252 = vmatpush3.msra.mxu1 %v1429_v61  ;;  %v1427_v43 = vld [vmem:[#allocation4 + $0x358] sm:$0xff] }
 0xc32   :  { %v2243_v47 = vpop.f32.mrf.mxu0 }
 0xc33   :  { %v1321_v55 = vadd.f32 %v1320_v48, %v1292_v49  ;;  %v1307_v54 = vadd.f32 %v2243_v47, %v1722_v45  ;;  %v1426_v48 = vld [vmem:[#allocation4 + $0x350] sm:$0xff] }
 0xc34   :  { %v1301_v51 = vpop.f32.mrf.mxu0 }
 0xc35   :  { %v1302_v62 = vadd.f32 %v1722_v45, %v1301_v51  ;;  %v1322_v0 = vadd.f32 %v1321_v55, %v1297_v50  ;;  %v1424_v55 = vld [vmem:[#allocation4 + $0x340] sm:$0xff]  ;;  %v1423_v51 = vld [vmem:[#allocation4 + $0x338] sm:$0xff] }
 0xc36   :  { %v2246_v59 = vpop.f32.mrf.mxu0 }
 0xc37   :  { %v1323_v1 = vadd.f32 %v1322_v0, %v1302_v62  ;;  %v1317_v60 = vadd.f32 %v2246_v59, %v1722_v45  ;;  %v1421_v0 = vld [vmem:[#allocation4 + $0x328] sm:$0xff]  ;;  %v1420_v59 = vld [vmem:[#allocation4 + $0x320] sm:$0xff] }
 0xc38   :  { %v1311_v2 = vpop.f32.mrf.mxu0 }
 0xc39   :  { %v1312_v57 = vadd.f32 %v1722_v45, %v1311_v2  ;;  %v1324_v3 = vadd.f32 %v1323_v1, %v1307_v54  ;;  %v1418_v1 = vld [vmem:[#allocation4 + $0x310] sm:$0xff]  ;;  %v1417_v2 = vld [vmem:[#allocation4 + $0x308] sm:$0xff] }
 0xc3b   :  { %v1325_v4 = vadd.f32 %v1324_v3, %v1312_v57  ;;  %v1568_v3 = vld [vmem:[%s2907_s7 + $0x78] sm:$0xff] }
 0xc3c   :  { %2291 = vmatprep.subr.mxu0 %v1568_v3 }
 0xc3d   :  { %v1326_v5 = vadd.f32 %v1325_v4, %v1317_v60  ;;  %2292 = vmatpush3.msra.mxu0 %v1568_v3  ;;  %v1566_v4 = vld [vmem:[%s2907_s7 + $0x68] sm:$0xff] }
 0xc3f   :  { %v1327_v6 = vrot.slane %v1326_v5, 4 }
 0xc41   :  { %v1328_v63 = vadd.f32 %v1327_v6, %v1326_v5  ;;  %v2772_v5 = vld [vmem:[%s2907_s7 + $0x60] sm:$0xff]  ;;  %v2777_v6 = vld [vmem:[%s2907_s7 + $0x58] sm:$0xff] }
 0xc43   :  { %v1329_v7 = vrot.slane %v1328_v63, 2 }
 0xc45   :  { %v1330_v8 = vadd.f32 %v1329_v7, %v1328_v63  ;;  %v2784_v63 = vld [vmem:[%s2907_s7 + $0x50] sm:$0xff]  ;;  %v2791_v7 = vld [vmem:[%s2907_s7 + $0x48] sm:$0xff] }
 0xc47   :  { %v1331_v9 = vrot.slane %v1330_v8, 1 }
 0xc49   :  { %v1332_v10 = vadd.f32 %v1331_v9, %v1330_v8  ;;  %v2798_v8 = vld [vmem:[%s2907_s7 + $0x40] sm:$0xff]  ;;  %v2805_v9 = vld [vmem:[%s2907_s7 + $0x38] sm:$0xff] }
 0xc4b   :  { %1333 = vrot.lane.b32.xlu0 %v1332_v10, %s2429_s30 }
 0xcbd   :  { %v1334_v11 = vpop.permute.xlu0 %1333 }
 0xcbe   :  { %v1335_v12 = vadd.f32 %v1334_v11, %v1332_v10  ;;  %v1559_v10 = vld [vmem:[%s2907_s7 + $0x30] sm:$0xff]  ;;  %v1558_v11 = vld [vmem:[%s2907_s7 + $0x28] sm:$0xff] }
 0xcc0   :  { %1336 = vrot.lane.b32.xlu1 %v1335_v12, %s2430_s10 }
 0xd32   :  { %v1337_v13 = vpop.permute.xlu1 %1336 }
 0xd33   :  { %v1338_v14 = vadd.f32 %v1337_v13, %v1335_v12  ;;  %v1557_v12 = vld [vmem:[%s2907_s7 + $0x20] sm:$0xff] }
 0xd35   :  { %v1339_v15 = vmul.f32 0.00390625, %v1338_v14 }
 0xd37   :  { %v1343_v16 = vrot.slane %v1339_v15, %v2551_v44 }
 0xd39   :  { %v2719_v17 = vsub.f32 %v1282_v58, %v1343_v16  ;;  %v2721_v18 = vsub.f32 %v1287_v53, %v1343_v16  ;;  %v2723_v19 = vsub.f32 %v1292_v49, %v1343_v16  ;;  %v2725_v20 = vsub.f32 %v1297_v50, %v1343_v16  ;;  %v1428_v53 = vld [vmem:[#allocation4 + $0x360] sm:$0xff]  ;;  %v1425_v49 = vld [vmem:[#allocation4 + $0x348] sm:$0xff] }
 0xd3a   :  { %v2731_v23 = vsub.f32 %v1302_v62, %v1343_v16  ;;  %v2735_v26 = vsub.f32 %v1307_v54, %v1343_v16  ;;  %v2739_v34 = vsub.f32 %v1312_v57, %v1343_v16  ;;  %v2743_v42 = vsub.f32 %v1317_v60, %v1343_v16  ;;  %2253 = vmatprep.subr.mxu1 %v1428_v53  ;;  %v1422_v62 = vld [vmem:[#allocation4 + $0x330] sm:$0xff]  ;;  %v1419_v54 = vld [vmem:[#allocation4 + $0x318] sm:$0xff]  ;;  %v1416_v57 = vld [vmem:[#allocation4 + $0x300] sm:$0xff] }
 0xd3b   :  { %v1352_v21 = vmul.f32 %v2719_v17, %v2719_v17  ;;  %v1353_v22 = vmul.f32 %v2721_v18, %v2721_v18  ;;  %v1354_v24 = vmul.f32 %v2723_v19, %v2723_v19  ;;  %v1355_v31 = vmul.f32 %v2725_v20, %v2725_v20  ;;  %2254 = vmatpush3.msra.mxu1 %v1428_v53  ;;  %v2762_v60 = vld [vmem:[%s2907_s7 + $0x70] sm:$0xff] }
 0xd3c   :  { %v1356_v35 = vmul.f32 %v2731_v23, %v2731_v23  ;;  %v1357_v46 = vmul.f32 %v2735_v26, %v2735_v26  ;;  %v1358_v28 = vmul.f32 %v2739_v34, %v2739_v34  ;;  %v1359_v30 = vmul.f32 %v2743_v42, %v2743_v42  ;;  %2255 = vmatprep.subr.mxu1 %v1427_v43 }
 0xd3d   :  { %v1360_v25 = vadd.f32 %v1353_v22, %v1352_v21  ;;  %2256 = vmatpush3.msra.mxu1 %v1427_v43  ;;  %2293 = vmatprep.subr.mxu0 %v2762_v60  ;;  %v1723_v21 = vld [vmem:[%s2905_s5 + $0x3] sm:$0x1] }
 0xd3e   :  { %2257 = vmatprep.subr.mxu1 %v1426_v48  ;;  %2294 = vmatpush3.msra.mxu0 %v2762_v60 }
 0xd3f   :  { %v1361_v32 = vadd.f32 %v1360_v25, %v1354_v24  ;;  %2258 = vmatpush3.msra.mxu1 %v1426_v48  ;;  %2295 = vmatprep.subr.mxu0 %v1566_v4 }
 0xd40   :  { %2259 = vmatprep.subr.mxu1 %v1425_v49  ;;  %2296 = vmatpush3.msra.mxu0 %v1566_v4 }
 0xd41   :  { %v1362_v41 = vadd.f32 %v1361_v32, %v1355_v31  ;;  %2260 = vmatpush3.msra.mxu1 %v1425_v49  ;;  %2297 = vmatprep.subr.mxu0 %v2772_v5  ;;  %v1725_v31 = vld [vmem:[%s2906_s6 + $0x3] ss:$0 sm:$0xff] }
 0xd42   :  { %2261 = vmatprep.subr.mxu1 %v1424_v55  ;;  %2298 = vmatpush3.msra.mxu0 %v2772_v5 }
 0xd43   :  { %v1363_v27 = vadd.f32 %v1362_v41, %v1356_v35  ;;  %2262 = vmatpush3.msra.mxu1 %v1424_v55  ;;  %2299 = vmatprep.subr.mxu0 %v2777_v6 }
 0xd44   :  { %2263 = vmatprep.subr.mxu1 %v1423_v51  ;;  %2300 = vmatpush3.msra.mxu0 %v2777_v6 }
 0xd45   :  { %v1364_v29 = vadd.f32 %v1363_v27, %v1357_v46  ;;  %2264 = vmatpush3.msra.mxu1 %v1423_v51  ;;  %2301 = vmatprep.subr.mxu0 %v2784_v63 }
 0xd46   :  { %2265 = vmatprep.subr.mxu1 %v1422_v62  ;;  %2302 = vmatpush3.msra.mxu0 %v2784_v63 }
 0xd47   :  { %v1365_v52 = vadd.f32 %v1364_v29, %v1358_v28  ;;  %2266 = vmatpush3.msra.mxu1 %v1422_v62  ;;  %2303 = vmatprep.subr.mxu0 %v2791_v7 }
 0xd48   :  { %2267 = vmatprep.subr.mxu1 %v1421_v0  ;;  %2304 = vmatpush3.msra.mxu0 %v2791_v7 }
 0xd49   :  { %v1366_v56 = vadd.f32 %v1365_v52, %v1359_v30  ;;  %2268 = vmatpush3.msra.mxu1 %v1421_v0  ;;  %2305 = vmatprep.subr.mxu0 %v2798_v8 }
 0xd4a   :  { %2269 = vmatprep.subr.mxu1 %v1420_v59  ;;  %2306 = vmatpush3.msra.mxu0 %v2798_v8 }
 0xd4b   :  { %v1367_v33 = vrot.slane %v1366_v56, 4  ;;  %2270 = vmatpush3.msra.mxu1 %v1420_v59  ;;  %2307 = vmatprep.subr.mxu0 %v2805_v9 }
 0xd4c   :  { %2271 = vmatprep.subr.mxu1 %v1419_v54  ;;  %2308 = vmatpush3.msra.mxu0 %v2805_v9 }
 0xd4d   :  { %v1368_v36 = vadd.f32 %v1367_v33, %v1366_v56  ;;  %2272 = vmatpush3.msra.mxu1 %v1419_v54  ;;  %2309 = vmatprep.subr.mxu0 %v1559_v10  ;;  %v1554_v56 = vld [vmem:[%s2907_s7 + $0x8] sm:$0xff]  ;;  %v1553_v33 = vld [vmem:[%s2907_s7] sm:$0xff] }
 0xd4e   :  { %2273 = vmatprep.subr.mxu1 %v1418_v1  ;;  %2310 = vmatpush3.msra.mxu0 %v1559_v10 }
 0xd4f   :  { %v1369_v39 = vrot.slane %v1368_v36, 2  ;;  %2274 = vmatpush3.msra.mxu1 %v1418_v1  ;;  %2311 = vmatprep.subr.mxu0 %v1558_v11 }
 0xd50   :  { %2275 = vmatprep.subr.mxu1 %v1417_v2  ;;  %2312 = vmatpush3.msra.mxu0 %v1558_v11 }
 0xd51   :  { %v1370_v45 = vadd.f32 %v1369_v39, %v1368_v36  ;;  %2276 = vmatpush3.msra.mxu1 %v1417_v2  ;;  %2313 = vmatprep.subr.mxu0 %v1557_v12 }
 0xd52   :  { %2277 = vmatprep.subr.mxu1 %v1416_v57  ;;  %2314 = vmatpush3.msra.mxu0 %v1557_v12 }
 0xd53   :  { %v1371_v40 = vrot.slane %v1370_v45, 1  ;;  %2278 = vmatpush3.msra.mxu1 %v1416_v57 }
 0xd54   :  { %2335 = vmatprep.subr.mxu1 %v1568_v3 }
 0xd55   :  { %v1372_v58 = vadd.f32 %v1371_v40, %v1370_v45 }
 0xd57   :  { %1373 = vrot.lane.b32.xlu0 %v1372_v58, %s2429_s30 }
 0xdc9   :  { %v1374_v47 = vpop.permute.xlu0 %1373 }
 0xdca   :  { %v2752_v50 = vadd.f32 %v1374_v47, %v1372_v58 }
 0xdcc   :  { %1376 = vrot.lane.b32.xlu1 %v2752_v50, %s2430_s10 }
 0xe3e   :  { %v1377_v13 = vpop.permute.xlu1 %1376 }
 0xe3f   :  { %v1378_v14 = vadd.f32 %v1377_v13, %v2752_v50 }
 0xe41   :  { %v1379_v15 = vmul.f32 0.00390625, %v1378_v14 }
 0xe43   :  { %v1382_v16 = vadd.f32 1e-05, %v1379_v15 }
 0xe45   :  { %2379 = vrsqrt.f32 %v1382_v16 }
 0xe52   :  { %v2380_v22 = vpop.eup %2379 }
 0xe53   :  { %v1384_v24 = vmul.f32 %v2380_v22, %v1723_v21 }
 0xe55   :  { %v1389_v25 = vrot.slane %v1384_v24, %v2551_v44 }
 0xe57   :  { %v1391_v32 = vmul.f32 %v1389_v25, %v2719_v17  ;;  %v1392_v35 = vmul.f32 %v1389_v25, %v2721_v18  ;;  %v1393_v41 = vmul.f32 %v1389_v25, %v2723_v19  ;;  %v1394_v28 = vmul.f32 %v1389_v25, %v2725_v20 }
 0xe58   :  { %v1395_v30 = vmul.f32 %v1389_v25, %v2731_v23  ;;  %v1396_v52 = vmul.f32 %v1389_v25, %v2735_v26  ;;  %v1397_v18 = vmul.f32 %v1389_v25, %v2739_v34  ;;  %v1398_v20 = vmul.f32 %v1389_v25, %v2743_v42  ;;  %v1556_v34 = vld [vmem:[%s2907_s7 + $0x18] sm:$0xff]  ;;  %v1555_v42 = vld [vmem:[%s2907_s7 + $0x10] sm:$0xff] }
 0xe59   :  { %v1407_v46 = vadd.f32 %v1725_v31, %v1391_v32  ;;  %v1408_v27 = vadd.f32 %v1725_v31, %v1392_v35  ;;  %v1409_v29 = vadd.f32 %v1725_v31, %v1393_v41  ;;  %v1410_v44 = vadd.f32 %v1725_v31, %v1394_v28  ;;  %2315 = vmatprep.subr.mxu0 %v1556_v34 }
 0xe5a   :  { %v1411_v17 = vadd.f32 %v1725_v31, %v1395_v30  ;;  %v1412_v19 = vadd.f32 %v1725_v31, %v1396_v52  ;;  %v1413_v23 = vadd.f32 %v1725_v31, %v1397_v18  ;;  %v1414_v26 = vadd.f32 %v1725_v31, %v1398_v20  ;;  %2316 = vmatpush3.msra.mxu0 %v1556_v34 }
 0xe5b   :  { %2279 = vmatprep.mubr.f32.mxu1 %v1407_v46  ;;  %2317 = vmatprep.subr.mxu0 %v1555_v42 }
 0xe5c   :  { %2280 = vmatmul.mubr.f32.vlgmr.msra.gmra.mxu1 %v1408_v27  ;;  %2318 = vmatpush3.msra.mxu0 %v1555_v42 }
 0xe5d   :  { %2282 = vmatprep.mubr.f32.mxu1 %v1409_v29  ;;  %2351 = vmatpush3.msra.mxu1 %v1568_v3 }
 0xe5e   :  { %2336 = vmatprep.subr.mxu1 %v2762_v60  ;;  %2319 = vmatprep.subr.mxu0 %v1554_v56 }
 0xe5f   :  { %2352 = vmatpush3.msra.mxu1 %v2762_v60  ;;  %2320 = vmatpush3.msra.mxu0 %v1554_v56 }
 0xe60   :  { %2283 = vmatmul.mubr.f32.gmra.mxu1 %v1410_v44  ;;  %2337 = vmatprep.subr.mxu1 %v1566_v4 }
 0xe61   :  { %2285 = vmatprep.mubr.f32.mxu1 %v1411_v17  ;;  %2353 = vmatpush3.msra.mxu1 %v1566_v4  ;;  %v1728_v4 = vld [vmem:[%s2908_s8] ss:$0 sm:$0xff] }
 0xe62   :  { %2338 = vmatprep.subr.mxu1 %v2772_v5  ;;  %2321 = vmatprep.subr.mxu0 %v1553_v33 }
 0xe63   :  { %2354 = vmatpush3.msra.mxu1 %v2772_v5  ;;  %2322 = vmatpush3.msra.mxu0 %v1553_v33 }
 0xe64   :  { %2286 = vmatmul.mubr.f32.gmra.mxu1 %v1412_v19  ;;  %2339 = vmatprep.subr.mxu1 %v2777_v6 }
 0xe65   :  { %2288 = vmatprep.mubr.f32.mxu1 %v1413_v23  ;;  %2355 = vmatpush3.msra.mxu1 %v2777_v6 }
 0xe66   :  { %2340 = vmatprep.subr.mxu1 %v2784_v63 }
 0xe67   :  { %2356 = vmatpush3.msra.mxu1 %v2784_v63 }
 0xe68   :  { %2289 = vmatmul.mubr.f32.gmra.mxu1 %v1414_v26  ;;  %2341 = vmatprep.subr.mxu1 %v2791_v7 }
 0xe69   :  { %2357 = vmatpush3.msra.mxu1 %v2791_v7 }
 0xe6a   :  { %2342 = vmatprep.subr.mxu1 %v2798_v8 }
 0xe6b   :  { %2358 = vmatpush3.msra.mxu1 %v2798_v8 }
 0xe6c   :  { %2343 = vmatprep.subr.mxu1 %v2805_v9 }
 0xe6d   :  { %2359 = vmatpush3.msra.mxu1 %v2805_v9 }
 0xe6e   :  { %2344 = vmatprep.subr.mxu1 %v1559_v10 }
 0xe6f   :  { %2360 = vmatpush3.msra.mxu1 %v1559_v10 }
 0xe70   :  { %2345 = vmatprep.subr.mxu1 %v1558_v11 }
 0xe71   :  { %2361 = vmatpush3.msra.mxu1 %v1558_v11 }
 0xe72   :  { %2346 = vmatprep.subr.mxu1 %v1557_v12 }
 0xe73   :  { %2362 = vmatpush3.msra.mxu1 %v1557_v12 }
 0xe74   :  { %2347 = vmatprep.subr.mxu1 %v1556_v34 }
 0xe75   :  { %2363 = vmatpush3.msra.mxu1 %v1556_v34 }
 0xe76   :  { %2348 = vmatprep.subr.mxu1 %v1555_v42 }
 0xe77   :  { %2364 = vmatpush3.msra.mxu1 %v1555_v42 }
 0xe78   :  { %2349 = vmatprep.subr.mxu1 %v1554_v56 }
 0xe79   :  { %2365 = vmatpush3.msra.mxu1 %v1554_v56 }
 0xe7a   :  { %2350 = vmatprep.subr.mxu1 %v1553_v33 }
 0xe7b   :  { %2366 = vmatpush3.msra.mxu1 %v1553_v33 }
 0xf1c   :  { %v2281_v38 = vpop.f32.mrf.mxu1 }
 0xf1d   :  { %v1512_v36 = vadd.f32 %v2281_v38, %v1727_v37 }
 0xf1e   :  { %v1506_v39 = vpop.f32.mrf.mxu1 }
 0xf1f   :  { %v1507_v45 = vadd.f32 %v1727_v37, %v1506_v39  ;;  %v1546_v61 = vmax.f32 %v1512_v36, 0.0 }
 0xf20   :  { %v2284_v40 = vpop.f32.mrf.mxu1 }
 0xf21   :  { %v1545_v58 = vmax.f32 %v1507_v45, 0.0  ;;  %v1522_v53 = vadd.f32 %v2284_v40, %v1727_v37 }
 0xf22   :  { %v1516_v43 = vpop.f32.mrf.mxu1 }
 0xf23   :  { %v1517_v48 = vadd.f32 %v1727_v37, %v1516_v43  ;;  %2323 = vmatprep.mubr.f32.mxu0 %v1545_v58  ;;  %v1548_v50 = vmax.f32 %v1522_v53, 0.0 }
 0xf24   :  { %v2287_v49 = vpop.f32.mrf.mxu1  ;;  %2324 = vmatmul.mubr.f32.vlgmr.msra.gmra.mxu0 %v1546_v61 }
 0xf25   :  { %v1547_v47 = vmax.f32 %v1517_v48, 0.0  ;;  %v1532_v55 = vadd.f32 %v2287_v49, %v1727_v37 }
 0xf26   :  { %v1526_v51 = vpop.f32.mrf.mxu1 }
 0xf27   :  { %v1527_v62 = vadd.f32 %v1727_v37, %v1526_v51  ;;  %2326 = vmatprep.mubr.f32.mxu0 %v1547_v47  ;;  %v1550_v54 = vmax.f32 %v1532_v55, 0.0 }
 0xf28   :  { %v2290_v0 = vpop.f32.mrf.mxu1  ;;  %2327 = vmatmul.mubr.f32.gmra.mxu0 %v1548_v50 }
 0xf29   :  { %v1549_v59 = vmax.f32 %v1527_v62, 0.0  ;;  %v1542_v1 = vadd.f32 %v2290_v0, %v1727_v37 }
 0xf2a   :  { %v1536_v2 = vpop.f32.mrf.mxu1 }
 0xf2b   :  { %v1537_v57 = vadd.f32 %v1727_v37, %v1536_v2  ;;  %2329 = vmatprep.mubr.f32.mxu0 %v1549_v59  ;;  %v1552_v60 = vmax.f32 %v1542_v1, 0.0 }
 0xf2c   :  { %2330 = vmatmul.mubr.f32.gmra.mxu0 %v1550_v54 }
 0xf2d   :  { %v1551_v3 = vmax.f32 %v1537_v57, 0.0 }
 0xf2f   :  { %2332 = vmatprep.mubr.f32.mxu1 %v1551_v3 }
 0xf30   :  { %2333 = vmatmul.mubr.f32.vlgmr.msra.gmra.mxu1 %v1552_v60 }
 0xfe4   :  { %v2325_v5 = vpop.f32.mrf.mxu0 }
 0xfe5   :  { %v1648_v6 = vadd.f32 %v2325_v5, %v1728_v4 }
 0xfe6   :  { %v1642_v63 = vpop.f32.mrf.mxu0 }
 0xfe7   :  { %1683 = vst.msk [vmem:[%s2909_s9 + $0x8] sm:$0xff] %vm1681_vm1, %v1648_v6  ;;  %v1643_v7 = vadd.f32 %v1728_v4, %v1642_v63 }
 0xfe8   :  { %v2328_v8 = vpop.f32.mrf.mxu0 }
 0xfe9   :  { %1682 = vst.msk [vmem:[%s2909_s9] sm:$0xff] %vm1681_vm1, %v1643_v7  ;;  %v1658_v9 = vadd.f32 %v2328_v8, %v1728_v4 }
 0xfea   :  { %v1652_v10 = vpop.f32.mrf.mxu0 }
 0xfeb   :  { %1685 = vst.msk [vmem:[%s2909_s9 + $0x18] sm:$0xff] %vm1681_vm1, %v1658_v9  ;;  %v1653_v11 = vadd.f32 %v1728_v4, %v1652_v10 }
 0xfec   :  { %v2331_v12 = vpop.f32.mrf.mxu0 }
 0xfed   :  { %1684 = vst.msk [vmem:[%s2909_s9 + $0x10] sm:$0xff] %vm1681_vm1, %v1653_v11  ;;  %v1668_v13 = vadd.f32 %v2331_v12, %v1728_v4 }
 0xfee   :  { %v1662_v14 = vpop.f32.mrf.mxu0 }
 0xfef   :  { %1687 = vst.msk [vmem:[%s2909_s9 + $0x28] sm:$0xff] %vm1681_vm1, %v1668_v13  ;;  %v1663_v15 = vadd.f32 %v1728_v4, %v1662_v14 }
 0xff0   :  { %v2334_v16 = vpop.f32.mrf.mxu1 }
 0xff1   :  { %1686 = vst.msk [vmem:[%s2909_s9 + $0x20] sm:$0xff] %vm1681_vm1, %v1663_v15  ;;  %v1678_v21 = vadd.f32 %v2334_v16, %v1728_v4 }
 0xff2   :  { %v1672_v22 = vpop.f32.mrf.mxu1 }
 0xff3   :  { %1689 = vst.msk [vmem:[%s2909_s9 + $0x38] sm:$0xff] %vm1681_vm1, %v1678_v21  ;;  %v1673_v24 = vadd.f32 %v1728_v4, %v1672_v22 }
 0xff5   :  { %1688 = vst.msk [vmem:[%s2909_s9 + $0x30] sm:$0xff] %vm1681_vm1, %v1673_v24 }
 0xff6   :  { %1694 = vsyncpa [#allocation3], 1 }
 0xff7   :  { %1695 = vsyncpa [#allocation5], 1 }

</bundles_post_ra>
